<compile_context>
chip_gen: v7x
topology: tpu7x:2x2x1
jax: 0.10.0
libtpu: 0.0.40
codegen_flags: <defaults>
</compile_context>

<pallas_src>
import math

import jax
import jax.numpy as jnp
from jax import lax
from jax.experimental import pallas as pl
from jax.experimental.pallas import tpu as pltpu

# ---------------- config (small synthetic LlamaConfig) ----------------
B = 2                                   # batch
S = 8                                   # seq len (q_len == kv_len, no cache)
HIDDEN = 32                             # hidden_size
NUM_HEADS = 4                           # num_attention_heads
NUM_KV_HEADS = 2                        # num_key_value_heads (GQA)
HEAD_DIM = HIDDEN // NUM_HEADS          # 8
HALF = HEAD_DIM // 2                    # 4
N_REP = NUM_HEADS // NUM_KV_HEADS       # num_key_value_groups = 2
Q_OUT = NUM_HEADS * HEAD_DIM            # 32
KV_OUT = NUM_KV_HEADS * HEAD_DIM        # 16
ROPE_THETA = 10000.0


# ---------------- fused Pallas kernel ----------------
def _fused_attn_kernel(x_ref, wqkv_ref, wo_ref, cos_ref, sin_ref, o_ref, attn_scratch):
    """Entire attention forward for all batches/heads in a single grid step.

    x:    (B*S, HIDDEN)  bf16          flattened hidden states
    wqkv: (HIDDEN, Q_OUT+2*KV_OUT) bf16  pre-transposed fused [Wq | Wk | Wv]
    wo:   (HIDDEN, HIDDEN) bf16        pre-transposed output projection
    cos:  (B*S, HALF)   f32            cos(freqs)
    sin:  (B*S, HALF)   f32            sin(freqs)
    o:    (B*S, HIDDEN) f32
    attn_scratch: VMEM (B*S, HIDDEN) f32  per-head outputs assembled here (no concat trees)
    """
    scale = 1.0 / math.sqrt(HEAD_DIM)

    # Fused QKV projection: one MXU matmul, bf16 operands -> f32 accumulation.
    qkv = jnp.dot(x_ref[...], wqkv_ref[...], preferred_element_type=jnp.float32)  # (B*S, 64) f32

    cos = cos_ref[...]
    sin = sin_ref[...]

    # Causal mask, shared across all (batch, head) tiles.
    rows = lax.broadcasted_iota(jnp.int32, (S, S), 0)
    cols = lax.broadcasted_iota(jnp.int32, (S, S), 1)
    causal = cols <= rows

    for b in range(B):  # static Python loops -> fully unrolled tiny tiles, no grid overhead
        r0 = b * S
        c = cos[r0:r0 + S]          # (S, HALF) f32
        s = sin[r0:r0 + S]          # (S, HALF) f32
        qkv_b = qkv[r0:r0 + S]      # (S, 64)   f32

        def rope_halves(off, sc=None):
            # RoPE in f32 on the VPU; halves are kept SEPARATE (no swap/concat/roll needed
            # at sub-lane head_dim) -- the score contraction is split over them below.
            x1 = qkv_b[:, off:off + HALF]
            x2 = qkv_b[:, off + HALF:off + HEAD_DIM]
            r1 = x1 * c - x2 * s
            r2 = x2 * c + x1 * s
            if sc is not None:      # fold 1/sqrt(head_dim) into q (S*D mults, not S*S)
                r1 = r1 * sc
                r2 = r2 * sc
            # bf16 only for the MXU operands; accumulation stays f32.
            return r1.astype(jnp.bfloat16), r2.astype(jnp.bfloat16)

        # RoPE each KV head ONCE; its N_REP query heads reuse it (explicit GQA reuse).
        k_halves, v_heads = [], []
        for kv in range(NUM_KV_HEADS):
            koff = Q_OUT + kv * HEAD_DIM
            voff = Q_OUT + KV_OUT + kv * HEAD_DIM
            k_halves.append(rope_halves(koff))
            v_heads.append(qkv_b[:, voff:voff + HEAD_DIM].astype(jnp.bfloat16))

        for h in range(NUM_HEADS):
            q1, q2 = rope_halves(h * HEAD_DIM, scale)
            k1, k2 = k_halves[h // N_REP]
            v_h = v_heads[h // N_REP]

            # q @ k^T contracting head_dim, decomposed over the two RoPE halves
            # (no in-kernel transpose, no reassembly of roped q/k).
            dn = (((1,), (1,)), ((), ()))
            scores = (lax.dot_general(q1, k1, dn, preferred_element_type=jnp.float32)
                      + lax.dot_general(q2, k2, dn, preferred_element_type=jnp.float32))
            scores = jnp.where(causal, scores, -1e30)

            # softmax in float32 (as in the module); reciprocal on the EUP slot.
            scores = scores - jnp.max(scores, axis=-1, keepdims=True)
            p = jnp.exp(scores)
            denom = jnp.sum(p, axis=-1, keepdims=True)
            p = p * pl.reciprocal(denom, approx=True)

            head_out = jnp.dot(p.astype(jnp.bfloat16), v_h,
                               preferred_element_type=jnp.float32)          # (S, HEAD_DIM) f32
            # Write directly into the resident VMEM slab -- no concat trees / vreg temps.
            attn_scratch[r0:r0 + S, h * HEAD_DIM:(h + 1) * HEAD_DIM] = head_out

    # Output projection fused into the same kernel, reading the lane-dense slab.
    # At real HIDDEN (multiple of 128) this store is lane-dense automatically; at the toy
    # HIDDEN=32 a forced (4,128) reshape would cost a sublane->lane relayout that outweighs
    # the masked-store saving, so we keep the natural shape here.
    attn = attn_scratch[...].astype(jnp.bfloat16)
    o_ref[...] = jnp.dot(attn, wo_ref[...], preferred_element_type=jnp.float32)


# ---------------- host-side (one-time) weight prep & RoPE tables ----------------
def prepare_fused_weights(wq, wk, wv, wo):
    """Hoisted out of the forward path: fuse, transpose and bf16-cast the weights once."""
    wqkv_t = jnp.concatenate([wq, wk, wv], axis=0).T.astype(jnp.bfloat16)   # (HIDDEN, 64)
    wo_t = wo.T.astype(jnp.bfloat16)                                        # (HIDDEN, HIDDEN)
    return wqkv_t, wo_t


def rotary_half_tables(position_ids):
    # LlamaRotaryEmbedding: inv_freq = 1/theta^(2i/d); only the half-tables are needed
    # because cos/sin are duplicated across the two halves in the module.
    inv_freq = 1.0 / (ROPE_THETA ** (jnp.arange(0, HEAD_DIM, 2, dtype=jnp.float32) / HEAD_DIM))
    pos = position_ids.astype(jnp.float32).reshape(-1)                      # (B*S,)
    freqs = pos[:, None] * inv_freq[None, :]                                # (B*S, HALF)
    return jnp.cos(freqs), jnp.sin(freqs)


# ---------------- module forward ----------------
def h2o_llama_attention_forward(hidden_states, wqkv_t, wo_t, position_ids):
    bsz, q_len, _ = hidden_states.shape
    # Activations go in as bf16 (MXU operand + half the input DMA bytes).
    xf = hidden_states.reshape(bsz * q_len, HIDDEN).astype(jnp.bfloat16)
    cos_h, sin_h = rotary_half_tables(position_ids)

    out = pl.pallas_call(
        _fused_attn_kernel,
        out_shape=jax.ShapeDtypeStruct((bsz * q_len, HIDDEN), jnp.float32),
        scratch_shapes=[pltpu.VMEM((bsz * q_len, HIDDEN), jnp.float32)],
    )(xf, wqkv_t, wo_t, cos_h, sin_h)
    return out.reshape(bsz, q_len, HIDDEN)


# ---------------- pure-JAX reference for verification ----------------
def reference_forward(hidden_states, wq, wk, wv, wo, position_ids):
    bsz, q_len, _ = hidden_states.shape
    q = hidden_states @ wq.T
    k = hidden_states @ wk.T
    v = hidden_states @ wv.T
    q = q.reshape(bsz, q_len, NUM_HEADS, HEAD_DIM).transpose(0, 2, 1, 3)
    k = k.reshape(bsz, q_len, NUM_KV_HEADS, HEAD_DIM).transpose(0, 2, 1, 3)
    v = v.reshape(bsz, q_len, NUM_KV_HEADS, HEAD_DIM).transpose(0, 2, 1, 3)

    inv_freq = 1.0 / (ROPE_THETA ** (jnp.arange(0, HEAD_DIM, 2, dtype=jnp.float32) / HEAD_DIM))
    freqs = position_ids.astype(jnp.float32)[:, :, None] * inv_freq[None, None, :]
    emb = jnp.concatenate([freqs, freqs], axis=-1)                          # (B, S, D)
    cos_ = jnp.cos(emb)[:, None]
    sin_ = jnp.sin(emb)[:, None]

    def rot_half(x):
        x1, x2 = x[..., :HALF], x[..., HALF:]
        return jnp.concatenate([-x2, x1], axis=-1)

    q = q * cos_ + rot_half(q) * sin_
    k = k * cos_ + rot_half(k) * sin_

    k = jnp.repeat(k, N_REP, axis=1)
    v = jnp.repeat(v, N_REP, axis=1)

    scores = jnp.einsum("bhqd,bhkd->bhqk", q, k) / math.sqrt(HEAD_DIM)
    causal = jnp.tril(jnp.ones((q_len, q_len), dtype=bool))
    scores = jnp.where(causal[None, None], scores, -1e30)
    p = jax.nn.softmax(scores, axis=-1)
    attn = jnp.einsum("bhqk,bhkd->bhqd", p, v)
    attn = attn.transpose(0, 2, 1, 3).reshape(bsz, q_len, HIDDEN)
    return attn @ wo.T


if __name__ == "__main__":
    key = jax.random.PRNGKey(0)
    k1, k2, k3, k4, k5 = jax.random.split(key, 5)

    hidden_states = jax.random.normal(k1, (B, S, HIDDEN), dtype=jnp.float32)
    wq = jax.random.normal(k2, (NUM_HEADS * HEAD_DIM, HIDDEN), dtype=jnp.float32) * 0.05
    wk = jax.random.normal(k3, (NUM_KV_HEADS * HEAD_DIM, HIDDEN), dtype=jnp.float32) * 0.05
    wv = jax.random.normal(k4, (NUM_KV_HEADS * HEAD_DIM, HIDDEN), dtype=jnp.float32) * 0.05
    wo = jax.random.normal(k5, (HIDDEN, HIDDEN), dtype=jnp.float32) * 0.05
    position_ids = jnp.broadcast_to(jnp.arange(S, dtype=jnp.int32)[None, :], (B, S))

    # One-time (hoisted) weight fusion/transpose/bf16 cast.
    wqkv_t, wo_t = prepare_fused_weights(wq, wk, wv, wo)

    out = h2o_llama_attention_forward(hidden_states, wqkv_t, wo_t, position_ids)
    out = jax.block_until_ready(out)

    ref = reference_forward(hidden_states, wq, wk, wv, wo, position_ids)
    assert out.shape == (B, S, HIDDEN)
    # Tolerance covers bf16 MXU operands (x/weights/q/k/p/v casts) and
    # pl.reciprocal(approx=True) in the softmax denominator, vs the f32 reference.
    assert jnp.allclose(out, ref, atol=3e-2, rtol=3e-2), "mismatch vs reference"

    # TODO(synk): H2O KV-cache slimming (past_key_value.update_slimming) and the
    # positional_rolling cache path are stateful Cache operations with no stateless
    # equivalent here (no Cache object); dropout is a no-op (p=0 / eval);
    # pretraining_tp>1 weight-slicing path not implemented.
    print("KERNEL_OK")
</pallas_src>

<mosaic_0001>
module attributes {stable_mosaic.version = 11 : i64} {
  func.func @_fused_attn_kernel(%arg0: memref<16x32xbf16, #tpu.memory_space<vmem>>, %arg1: memref<32x64xbf16, #tpu.memory_space<vmem>>, %arg2: memref<32x32xbf16, #tpu.memory_space<vmem>>, %arg3: memref<16x4xf32, #tpu.memory_space<vmem>>, %arg4: memref<16x4xf32, #tpu.memory_space<vmem>>, %arg5: memref<16x32xf32, #tpu.memory_space<vmem>>, %arg6: memref<16x32xf32, #tpu.memory_space<vmem>>) attributes {dimension_semantics = [], scalar_prefetch = 0 : i64, scratch_operands = 1 : i64, tpu.core_type = #tpu.core_type<tc>} {
    %c0 = arith.constant 0 : index
    %c0_0 = arith.constant 0 : index
    %0 = vector.load %arg0[%c0, %c0_0] : memref<16x32xbf16, #tpu.memory_space<vmem>>, vector<16x32xbf16>
    %c0_1 = arith.constant 0 : index
    %c0_2 = arith.constant 0 : index
    %1 = vector.load %arg1[%c0_1, %c0_2] : memref<32x64xbf16, #tpu.memory_space<vmem>>, vector<32x64xbf16>
    %cst = arith.constant dense<0.000000e+00> : vector<16x64xf32>
    %2 = tpu.matmul %0, %1, %cst {dimension_numbers = #tpu.dot_dimension_numbers<[1], [0], [0], [1], [0, 0, 1, 1], [], []>} : vector<16x32xbf16>, vector<32x64xbf16>, vector<16x64xf32> -> vector<16x64xf32>
    %c0_3 = arith.constant 0 : index
    %c0_4 = arith.constant 0 : index
    %3 = vector.load %arg3[%c0_3, %c0_4] : memref<16x4xf32, #tpu.memory_space<vmem>>, vector<16x4xf32>
    %c0_5 = arith.constant 0 : index
    %c0_6 = arith.constant 0 : index
    %4 = vector.load %arg4[%c0_5, %c0_6] : memref<16x4xf32, #tpu.memory_space<vmem>>, vector<16x4xf32>
    %5 = tpu.iota {dimensions = array<i32: 0>} : vector<8x8xi32>
    %6 = tpu.iota {dimensions = array<i32: 1>} : vector<8x8xi32>
    %7 = arith.cmpi sle, %6, %5 : vector<8x8xi32>
    %8 = vector.extract_strided_slice %3 {offsets = [0, 0], sizes = [8, 4], strides = [1, 1]} : vector<16x4xf32> to vector<8x4xf32>
    %9 = vector.extract_strided_slice %4 {offsets = [0, 0], sizes = [8, 4], strides = [1, 1]} : vector<16x4xf32> to vector<8x4xf32>
    %10 = vector.extract_strided_slice %2 {offsets = [0, 0], sizes = [8, 64], strides = [1, 1]} : vector<16x64xf32> to vector<8x64xf32>
    %11 = vector.extract_strided_slice %10 {offsets = [0, 32], sizes = [8, 4], strides = [1, 1]} : vector<8x64xf32> to vector<8x4xf32>
    %12 = vector.extract_strided_slice %10 {offsets = [0, 36], sizes = [8, 4], strides = [1, 1]} : vector<8x64xf32> to vector<8x4xf32>
    %13 = arith.mulf %11, %8 : vector<8x4xf32>
    %14 = arith.mulf %12, %9 : vector<8x4xf32>
    %15 = arith.subf %13, %14 : vector<8x4xf32>
    %16 = arith.mulf %12, %8 : vector<8x4xf32>
    %17 = arith.mulf %11, %9 : vector<8x4xf32>
    %18 = arith.addf %16, %17 : vector<8x4xf32>
    %19 = arith.truncf %15 : vector<8x4xf32> to vector<8x4xbf16>
    %20 = arith.truncf %18 : vector<8x4xf32> to vector<8x4xbf16>
    %21 = vector.extract_strided_slice %10 {offsets = [0, 48], sizes = [8, 8], strides = [1, 1]} : vector<8x64xf32> to vector<8x8xf32>
    %22 = arith.truncf %21 : vector<8x8xf32> to vector<8x8xbf16>
    %23 = vector.extract_strided_slice %10 {offsets = [0, 40], sizes = [8, 4], strides = [1, 1]} : vector<8x64xf32> to vector<8x4xf32>
    %24 = vector.extract_strided_slice %10 {offsets = [0, 44], sizes = [8, 4], strides = [1, 1]} : vector<8x64xf32> to vector<8x4xf32>
    %25 = arith.mulf %23, %8 : vector<8x4xf32>
    %26 = arith.mulf %24, %9 : vector<8x4xf32>
    %27 = arith.subf %25, %26 : vector<8x4xf32>
    %28 = arith.mulf %24, %8 : vector<8x4xf32>
    %29 = arith.mulf %23, %9 : vector<8x4xf32>
    %30 = arith.addf %28, %29 : vector<8x4xf32>
    %31 = arith.truncf %27 : vector<8x4xf32> to vector<8x4xbf16>
    %32 = arith.truncf %30 : vector<8x4xf32> to vector<8x4xbf16>
    %33 = vector.extract_strided_slice %10 {offsets = [0, 56], sizes = [8, 8], strides = [1, 1]} : vector<8x64xf32> to vector<8x8xf32>
    %34 = arith.truncf %33 : vector<8x8xf32> to vector<8x8xbf16>
    %35 = vector.extract_strided_slice %10 {offsets = [0, 0], sizes = [8, 4], strides = [1, 1]} : vector<8x64xf32> to vector<8x4xf32>
    %36 = vector.extract_strided_slice %10 {offsets = [0, 4], sizes = [8, 4], strides = [1, 1]} : vector<8x64xf32> to vector<8x4xf32>
    %37 = arith.mulf %35, %8 : vector<8x4xf32>
    %38 = arith.mulf %36, %9 : vector<8x4xf32>
    %39 = arith.subf %37, %38 : vector<8x4xf32>
    %40 = arith.mulf %36, %8 : vector<8x4xf32>
    %41 = arith.mulf %35, %9 : vector<8x4xf32>
    %42 = arith.addf %40, %41 : vector<8x4xf32>
    %cst_7 = arith.constant 0.353553385 : f32
    %43 = vector.broadcast %cst_7 : f32 to vector<8x4xf32>
    %44 = arith.mulf %39, %43 : vector<8x4xf32>
    %cst_8 = arith.constant 0.353553385 : f32
    %45 = vector.broadcast %cst_8 : f32 to vector<8x4xf32>
    %46 = arith.mulf %42, %45 : vector<8x4xf32>
    %47 = arith.truncf %44 : vector<8x4xf32> to vector<8x4xbf16>
    %48 = arith.truncf %46 : vector<8x4xf32> to vector<8x4xbf16>
    %cst_9 = arith.constant dense<0.000000e+00> : vector<8x8xf32>
    %49 = tpu.matmul %47, %19, %cst_9 {dimension_numbers = #tpu.dot_dimension_numbers<[1], [1], [0], [0], [0, 0, 1, 0], [], []>} : vector<8x4xbf16>, vector<8x4xbf16>, vector<8x8xf32> -> vector<8x8xf32>
    %cst_10 = arith.constant dense<0.000000e+00> : vector<8x8xf32>
    %50 = tpu.matmul %48, %20, %cst_10 {dimension_numbers = #tpu.dot_dimension_numbers<[1], [1], [0], [0], [0, 0, 1, 0], [], []>} : vector<8x4xbf16>, vector<8x4xbf16>, vector<8x8xf32> -> vector<8x8xf32>
    %51 = arith.addf %49, %50 : vector<8x8xf32>
    %cst_11 = arith.constant -1.000000e+30 : f32
    %52 = vector.broadcast %cst_11 : f32 to vector<8x8xf32>
    %53 = arith.select %7, %51, %52 : vector<8x8xi1>, vector<8x8xf32>
    %cst_12 = arith.constant dense<0xFF800000> : vector<8xf32>
    %54 = vector.multi_reduction <maximumf>, %53, %cst_12 [1] : vector<8x8xf32> to vector<8xf32>
    %55 = vector.shape_cast %54 : vector<8xf32> to vector<8x1xf32>
    %56 = vector.broadcast %55 : vector<8x1xf32> to vector<8x8xf32>
    %57 = arith.subf %53, %56 : vector<8x8xf32>
    %58 = math.exp %57 : vector<8x8xf32>
    %cst_13 = arith.constant dense<0.000000e+00> : vector<8xf32>
    %59 = vector.multi_reduction <add>, %58, %cst_13 [1] : vector<8x8xf32> to vector<8xf32>
    %60 = vector.shape_cast %59 : vector<8xf32> to vector<8x1xf32>
    %61 = tpu.reciprocal %60 {approx = true} : vector<8x1xf32> -> vector<8x1xf32>
    %62 = vector.broadcast %61 : vector<8x1xf32> to vector<8x8xf32>
    %63 = arith.mulf %58, %62 : vector<8x8xf32>
    %64 = arith.truncf %63 : vector<8x8xf32> to vector<8x8xbf16>
    %cst_14 = arith.constant dense<0.000000e+00> : vector<8x8xf32>
    %65 = tpu.matmul %64, %22, %cst_14 {dimension_numbers = #tpu.dot_dimension_numbers<[1], [0], [0], [1], [0, 0, 1, 1], [], []>} : vector<8x8xbf16>, vector<8x8xbf16>, vector<8x8xf32> -> vector<8x8xf32>
    %c0_15 = arith.constant 0 : index
    %c0_16 = arith.constant 0 : index
    %66 = vector.load %arg6[%c0_15, %c0_16] : memref<16x32xf32, #tpu.memory_space<vmem>>, vector<8x8xf32>
    tpu.vector_store %arg6[%c0_15, %c0_16], %65 {strides = array<i32>} : memref<16x32xf32, #tpu.memory_space<vmem>>, vector<8x8xf32>,
    %67 = vector.extract_strided_slice %10 {offsets = [0, 8], sizes = [8, 4], strides = [1, 1]} : vector<8x64xf32> to vector<8x4xf32>
    %68 = vector.extract_strided_slice %10 {offsets = [0, 12], sizes = [8, 4], strides = [1, 1]} : vector<8x64xf32> to vector<8x4xf32>
    %69 = arith.mulf %67, %8 : vector<8x4xf32>
    %70 = arith.mulf %68, %9 : vector<8x4xf32>
    %71 = arith.subf %69, %70 : vector<8x4xf32>
    %72 = arith.mulf %68, %8 : vector<8x4xf32>
    %73 = arith.mulf %67, %9 : vector<8x4xf32>
    %74 = arith.addf %72, %73 : vector<8x4xf32>
    %cst_17 = arith.constant 0.353553385 : f32
    %75 = vector.broadcast %cst_17 : f32 to vector<8x4xf32>
    %76 = arith.mulf %71, %75 : vector<8x4xf32>
    %cst_18 = arith.constant 0.353553385 : f32
    %77 = vector.broadcast %cst_18 : f32 to vector<8x4xf32>
    %78 = arith.mulf %74, %77 : vector<8x4xf32>
    %79 = arith.truncf %76 : vector<8x4xf32> to vector<8x4xbf16>
    %80 = arith.truncf %78 : vector<8x4xf32> to vector<8x4xbf16>
    %cst_19 = arith.constant dense<0.000000e+00> : vector<8x8xf32>
    %81 = tpu.matmul %79, %19, %cst_19 {dimension_numbers = #tpu.dot_dimension_numbers<[1], [1], [0], [0], [0, 0, 1, 0], [], []>} : vector<8x4xbf16>, vector<8x4xbf16>, vector<8x8xf32> -> vector<8x8xf32>
    %cst_20 = arith.constant dense<0.000000e+00> : vector<8x8xf32>
    %82 = tpu.matmul %80, %20, %cst_20 {dimension_numbers = #tpu.dot_dimension_numbers<[1], [1], [0], [0], [0, 0, 1, 0], [], []>} : vector<8x4xbf16>, vector<8x4xbf16>, vector<8x8xf32> -> vector<8x8xf32>
    %83 = arith.addf %81, %82 : vector<8x8xf32>
    %cst_21 = arith.constant -1.000000e+30 : f32
    %84 = vector.broadcast %cst_21 : f32 to vector<8x8xf32>
    %85 = arith.select %7, %83, %84 : vector<8x8xi1>, vector<8x8xf32>
    %cst_22 = arith.constant dense<0xFF800000> : vector<8xf32>
    %86 = vector.multi_reduction <maximumf>, %85, %cst_22 [1] : vector<8x8xf32> to vector<8xf32>
    %87 = vector.shape_cast %86 : vector<8xf32> to vector<8x1xf32>
    %88 = vector.broadcast %87 : vector<8x1xf32> to vector<8x8xf32>
    %89 = arith.subf %85, %88 : vector<8x8xf32>
    %90 = math.exp %89 : vector<8x8xf32>
    %cst_23 = arith.constant dense<0.000000e+00> : vector<8xf32>
    %91 = vector.multi_reduction <add>, %90, %cst_23 [1] : vector<8x8xf32> to vector<8xf32>
    %92 = vector.shape_cast %91 : vector<8xf32> to vector<8x1xf32>
    %93 = tpu.reciprocal %92 {approx = true} : vector<8x1xf32> -> vector<8x1xf32>
    %94 = vector.broadcast %93 : vector<8x1xf32> to vector<8x8xf32>
    %95 = arith.mulf %90, %94 : vector<8x8xf32>
    %96 = arith.truncf %95 : vector<8x8xf32> to vector<8x8xbf16>
    %cst_24 = arith.constant dense<0.000000e+00> : vector<8x8xf32>
    %97 = tpu.matmul %96, %22, %cst_24 {dimension_numbers = #tpu.dot_dimension_numbers<[1], [0], [0], [1], [0, 0, 1, 1], [], []>} : vector<8x8xbf16>, vector<8x8xbf16>, vector<8x8xf32> -> vector<8x8xf32>
    %c0_25 = arith.constant 0 : index
    %c8 = arith.constant 8 : index
    %98 = vector.load %arg6[%c0_25, %c8] : memref<16x32xf32, #tpu.memory_space<vmem>>, vector<8x8xf32>
    tpu.vector_store %arg6[%c0_25, %c8], %97 {strides = array<i32>} : memref<16x32xf32, #tpu.memory_space<vmem>>, vector<8x8xf32>,
    %99 = vector.extract_strided_slice %10 {offsets = [0, 16], sizes = [8, 4], strides = [1, 1]} : vector<8x64xf32> to vector<8x4xf32>
    %100 = vector.extract_strided_slice %10 {offsets = [0, 20], sizes = [8, 4], strides = [1, 1]} : vector<8x64xf32> to vector<8x4xf32>
    %101 = arith.mulf %99, %8 : vector<8x4xf32>
    %102 = arith.mulf %100, %9 : vector<8x4xf32>
    %103 = arith.subf %101, %102 : vector<8x4xf32>
    %104 = arith.mulf %100, %8 : vector<8x4xf32>
    %105 = arith.mulf %99, %9 : vector<8x4xf32>
    %106 = arith.addf %104, %105 : vector<8x4xf32>
    %cst_26 = arith.constant 0.353553385 : f32
    %107 = vector.broadcast %cst_26 : f32 to vector<8x4xf32>
    %108 = arith.mulf %103, %107 : vector<8x4xf32>
    %cst_27 = arith.constant 0.353553385 : f32
    %109 = vector.broadcast %cst_27 : f32 to vector<8x4xf32>
    %110 = arith.mulf %106, %109 : vector<8x4xf32>
    %111 = arith.truncf %108 : vector<8x4xf32> to vector<8x4xbf16>
    %112 = arith.truncf %110 : vector<8x4xf32> to vector<8x4xbf16>
    %cst_28 = arith.constant dense<0.000000e+00> : vector<8x8xf32>
    %113 = tpu.matmul %111, %31, %cst_28 {dimension_numbers = #tpu.dot_dimension_numbers<[1], [1], [0], [0], [0, 0, 1, 0], [], []>} : vector<8x4xbf16>, vector<8x4xbf16>, vector<8x8xf32> -> vector<8x8xf32>
    %cst_29 = arith.constant dense<0.000000e+00> : vector<8x8xf32>
    %114 = tpu.matmul %112, %32, %cst_29 {dimension_numbers = #tpu.dot_dimension_numbers<[1], [1], [0], [0], [0, 0, 1, 0], [], []>} : vector<8x4xbf16>, vector<8x4xbf16>, vector<8x8xf32> -> vector<8x8xf32>
    %115 = arith.addf %113, %114 : vector<8x8xf32>
    %cst_30 = arith.constant -1.000000e+30 : f32
    %116 = vector.broadcast %cst_30 : f32 to vector<8x8xf32>
    %117 = arith.select %7, %115, %116 : vector<8x8xi1>, vector<8x8xf32>
    %cst_31 = arith.constant dense<0xFF800000> : vector<8xf32>
    %118 = vector.multi_reduction <maximumf>, %117, %cst_31 [1] : vector<8x8xf32> to vector<8xf32>
    %119 = vector.shape_cast %118 : vector<8xf32> to vector<8x1xf32>
    %120 = vector.broadcast %119 : vector<8x1xf32> to vector<8x8xf32>
    %121 = arith.subf %117, %120 : vector<8x8xf32>
    %122 = math.exp %121 : vector<8x8xf32>
    %cst_32 = arith.constant dense<0.000000e+00> : vector<8xf32>
    %123 = vector.multi_reduction <add>, %122, %cst_32 [1] : vector<8x8xf32> to vector<8xf32>
    %124 = vector.shape_cast %123 : vector<8xf32> to vector<8x1xf32>
    %125 = tpu.reciprocal %124 {approx = true} : vector<8x1xf32> -> vector<8x1xf32>
    %126 = vector.broadcast %125 : vector<8x1xf32> to vector<8x8xf32>
    %127 = arith.mulf %122, %126 : vector<8x8xf32>
    %128 = arith.truncf %127 : vector<8x8xf32> to vector<8x8xbf16>
    %cst_33 = arith.constant dense<0.000000e+00> : vector<8x8xf32>
    %129 = tpu.matmul %128, %34, %cst_33 {dimension_numbers = #tpu.dot_dimension_numbers<[1], [0], [0], [1], [0, 0, 1, 1], [], []>} : vector<8x8xbf16>, vector<8x8xbf16>, vector<8x8xf32> -> vector<8x8xf32>
    %c0_34 = arith.constant 0 : index
    %c16 = arith.constant 16 : index
    %130 = vector.load %arg6[%c0_34, %c16] : memref<16x32xf32, #tpu.memory_space<vmem>>, vector<8x8xf32>
    tpu.vector_store %arg6[%c0_34, %c16], %129 {strides = array<i32>} : memref<16x32xf32, #tpu.memory_space<vmem>>, vector<8x8xf32>,
    %131 = vector.extract_strided_slice %10 {offsets = [0, 24], sizes = [8, 4], strides = [1, 1]} : vector<8x64xf32> to vector<8x4xf32>
    %132 = vector.extract_strided_slice %10 {offsets = [0, 28], sizes = [8, 4], strides = [1, 1]} : vector<8x64xf32> to vector<8x4xf32>
    %133 = arith.mulf %131, %8 : vector<8x4xf32>
    %134 = arith.mulf %132, %9 : vector<8x4xf32>
    %135 = arith.subf %133, %134 : vector<8x4xf32>
    %136 = arith.mulf %132, %8 : vector<8x4xf32>
    %137 = arith.mulf %131, %9 : vector<8x4xf32>
    %138 = arith.addf %136, %137 : vector<8x4xf32>
    %cst_35 = arith.constant 0.353553385 : f32
    %139 = vector.broadcast %cst_35 : f32 to vector<8x4xf32>
    %140 = arith.mulf %135, %139 : vector<8x4xf32>
    %cst_36 = arith.constant 0.353553385 : f32
    %141 = vector.broadcast %cst_36 : f32 to vector<8x4xf32>
    %142 = arith.mulf %138, %141 : vector<8x4xf32>
    %143 = arith.truncf %140 : vector<8x4xf32> to vector<8x4xbf16>
    %144 = arith.truncf %142 : vector<8x4xf32> to vector<8x4xbf16>
    %cst_37 = arith.constant dense<0.000000e+00> : vector<8x8xf32>
    %145 = tpu.matmul %143, %31, %cst_37 {dimension_numbers = #tpu.dot_dimension_numbers<[1], [1], [0], [0], [0, 0, 1, 0], [], []>} : vector<8x4xbf16>, vector<8x4xbf16>, vector<8x8xf32> -> vector<8x8xf32>
    %cst_38 = arith.constant dense<0.000000e+00> : vector<8x8xf32>
    %146 = tpu.matmul %144, %32, %cst_38 {dimension_numbers = #tpu.dot_dimension_numbers<[1], [1], [0], [0], [0, 0, 1, 0], [], []>} : vector<8x4xbf16>, vector<8x4xbf16>, vector<8x8xf32> -> vector<8x8xf32>
    %147 = arith.addf %145, %146 : vector<8x8xf32>
    %cst_39 = arith.constant -1.000000e+30 : f32
    %148 = vector.broadcast %cst_39 : f32 to vector<8x8xf32>
    %149 = arith.select %7, %147, %148 : vector<8x8xi1>, vector<8x8xf32>
    %cst_40 = arith.constant dense<0xFF800000> : vector<8xf32>
    %150 = vector.multi_reduction <maximumf>, %149, %cst_40 [1] : vector<8x8xf32> to vector<8xf32>
    %151 = vector.shape_cast %150 : vector<8xf32> to vector<8x1xf32>
    %152 = vector.broadcast %151 : vector<8x1xf32> to vector<8x8xf32>
    %153 = arith.subf %149, %152 : vector<8x8xf32>
    %154 = math.exp %153 : vector<8x8xf32>
    %cst_41 = arith.constant dense<0.000000e+00> : vector<8xf32>
    %155 = vector.multi_reduction <add>, %154, %cst_41 [1] : vector<8x8xf32> to vector<8xf32>
    %156 = vector.shape_cast %155 : vector<8xf32> to vector<8x1xf32>
    %157 = tpu.reciprocal %156 {approx = true} : vector<8x1xf32> -> vector<8x1xf32>
    %158 = vector.broadcast %157 : vector<8x1xf32> to vector<8x8xf32>
    %159 = arith.mulf %154, %158 : vector<8x8xf32>
    %160 = arith.truncf %159 : vector<8x8xf32> to vector<8x8xbf16>
    %cst_42 = arith.constant dense<0.000000e+00> : vector<8x8xf32>
    %161 = tpu.matmul %160, %34, %cst_42 {dimension_numbers = #tpu.dot_dimension_numbers<[1], [0], [0], [1], [0, 0, 1, 1], [], []>} : vector<8x8xbf16>, vector<8x8xbf16>, vector<8x8xf32> -> vector<8x8xf32>
    %c0_43 = arith.constant 0 : index
    %c24 = arith.constant 24 : index
    %162 = vector.load %arg6[%c0_43, %c24] : memref<16x32xf32, #tpu.memory_space<vmem>>, vector<8x8xf32>
    tpu.vector_store %arg6[%c0_43, %c24], %161 {strides = array<i32>} : memref<16x32xf32, #tpu.memory_space<vmem>>, vector<8x8xf32>,
    %163 = vector.extract_strided_slice %3 {offsets = [8, 0], sizes = [8, 4], strides = [1, 1]} : vector<16x4xf32> to vector<8x4xf32>
    %164 = vector.extract_strided_slice %4 {offsets = [8, 0], sizes = [8, 4], strides = [1, 1]} : vector<16x4xf32> to vector<8x4xf32>
    %165 = vector.extract_strided_slice %2 {offsets = [8, 0], sizes = [8, 64], strides = [1, 1]} : vector<16x64xf32> to vector<8x64xf32>
    %166 = vector.extract_strided_slice %165 {offsets = [0, 32], sizes = [8, 4], strides = [1, 1]} : vector<8x64xf32> to vector<8x4xf32>
    %167 = vector.extract_strided_slice %165 {offsets = [0, 36], sizes = [8, 4], strides = [1, 1]} : vector<8x64xf32> to vector<8x4xf32>
    %168 = arith.mulf %166, %163 : vector<8x4xf32>
    %169 = arith.mulf %167, %164 : vector<8x4xf32>
    %170 = arith.subf %168, %169 : vector<8x4xf32>
    %171 = arith.mulf %167, %163 : vector<8x4xf32>
    %172 = arith.mulf %166, %164 : vector<8x4xf32>
    %173 = arith.addf %171, %172 : vector<8x4xf32>
    %174 = arith.truncf %170 : vector<8x4xf32> to vector<8x4xbf16>
    %175 = arith.truncf %173 : vector<8x4xf32> to vector<8x4xbf16>
    %176 = vector.extract_strided_slice %165 {offsets = [0, 48], sizes = [8, 8], strides = [1, 1]} : vector<8x64xf32> to vector<8x8xf32>
    %177 = arith.truncf %176 : vector<8x8xf32> to vector<8x8xbf16>
    %178 = vector.extract_strided_slice %165 {offsets = [0, 40], sizes = [8, 4], strides = [1, 1]} : vector<8x64xf32> to vector<8x4xf32>
    %179 = vector.extract_strided_slice %165 {offsets = [0, 44], sizes = [8, 4], strides = [1, 1]} : vector<8x64xf32> to vector<8x4xf32>
    %180 = arith.mulf %178, %163 : vector<8x4xf32>
    %181 = arith.mulf %179, %164 : vector<8x4xf32>
    %182 = arith.subf %180, %181 : vector<8x4xf32>
    %183 = arith.mulf %179, %163 : vector<8x4xf32>
    %184 = arith.mulf %178, %164 : vector<8x4xf32>
    %185 = arith.addf %183, %184 : vector<8x4xf32>
    %186 = arith.truncf %182 : vector<8x4xf32> to vector<8x4xbf16>
    %187 = arith.truncf %185 : vector<8x4xf32> to vector<8x4xbf16>
    %188 = vector.extract_strided_slice %165 {offsets = [0, 56], sizes = [8, 8], strides = [1, 1]} : vector<8x64xf32> to vector<8x8xf32>
    %189 = arith.truncf %188 : vector<8x8xf32> to vector<8x8xbf16>
    %190 = vector.extract_strided_slice %165 {offsets = [0, 0], sizes = [8, 4], strides = [1, 1]} : vector<8x64xf32> to vector<8x4xf32>
    %191 = vector.extract_strided_slice %165 {offsets = [0, 4], sizes = [8, 4], strides = [1, 1]} : vector<8x64xf32> to vector<8x4xf32>
    %192 = arith.mulf %190, %163 : vector<8x4xf32>
    %193 = arith.mulf %191, %164 : vector<8x4xf32>
    %194 = arith.subf %192, %193 : vector<8x4xf32>
    %195 = arith.mulf %191, %163 : vector<8x4xf32>
    %196 = arith.mulf %190, %164 : vector<8x4xf32>
    %197 = arith.addf %195, %196 : vector<8x4xf32>
    %cst_44 = arith.constant 0.353553385 : f32
    %198 = vector.broadcast %cst_44 : f32 to vector<8x4xf32>
    %199 = arith.mulf %194, %198 : vector<8x4xf32>
    %cst_45 = arith.constant 0.353553385 : f32
    %200 = vector.broadcast %cst_45 : f32 to vector<8x4xf32>
    %201 = arith.mulf %197, %200 : vector<8x4xf32>
    %202 = arith.truncf %199 : vector<8x4xf32> to vector<8x4xbf16>
    %203 = arith.truncf %201 : vector<8x4xf32> to vector<8x4xbf16>
    %cst_46 = arith.constant dense<0.000000e+00> : vector<8x8xf32>
    %204 = tpu.matmul %202, %174, %cst_46 {dimension_numbers = #tpu.dot_dimension_numbers<[1], [1], [0], [0], [0, 0, 1, 0], [], []>} : vector<8x4xbf16>, vector<8x4xbf16>, vector<8x8xf32> -> vector<8x8xf32>
    %cst_47 = arith.constant dense<0.000000e+00> : vector<8x8xf32>
    %205 = tpu.matmul %203, %175, %cst_47 {dimension_numbers = #tpu.dot_dimension_numbers<[1], [1], [0], [0], [0, 0, 1, 0], [], []>} : vector<8x4xbf16>, vector<8x4xbf16>, vector<8x8xf32> -> vector<8x8xf32>
    %206 = arith.addf %204, %205 : vector<8x8xf32>
    %cst_48 = arith.constant -1.000000e+30 : f32
    %207 = vector.broadcast %cst_48 : f32 to vector<8x8xf32>
    %208 = arith.select %7, %206, %207 : vector<8x8xi1>, vector<8x8xf32>
    %cst_49 = arith.constant dense<0xFF800000> : vector<8xf32>
    %209 = vector.multi_reduction <maximumf>, %208, %cst_49 [1] : vector<8x8xf32> to vector<8xf32>
    %210 = vector.shape_cast %209 : vector<8xf32> to vector<8x1xf32>
    %211 = vector.broadcast %210 : vector<8x1xf32> to vector<8x8xf32>
    %212 = arith.subf %208, %211 : vector<8x8xf32>
    %213 = math.exp %212 : vector<8x8xf32>
    %cst_50 = arith.constant dense<0.000000e+00> : vector<8xf32>
    %214 = vector.multi_reduction <add>, %213, %cst_50 [1] : vector<8x8xf32> to vector<8xf32>
    %215 = vector.shape_cast %214 : vector<8xf32> to vector<8x1xf32>
    %216 = tpu.reciprocal %215 {approx = true} : vector<8x1xf32> -> vector<8x1xf32>
    %217 = vector.broadcast %216 : vector<8x1xf32> to vector<8x8xf32>
    %218 = arith.mulf %213, %217 : vector<8x8xf32>
    %219 = arith.truncf %218 : vector<8x8xf32> to vector<8x8xbf16>
    %cst_51 = arith.constant dense<0.000000e+00> : vector<8x8xf32>
    %220 = tpu.matmul %219, %177, %cst_51 {dimension_numbers = #tpu.dot_dimension_numbers<[1], [0], [0], [1], [0, 0, 1, 1], [], []>} : vector<8x8xbf16>, vector<8x8xbf16>, vector<8x8xf32> -> vector<8x8xf32>
    %c8_52 = arith.constant 8 : index
    %c0_53 = arith.constant 0 : index
    %221 = vector.load %arg6[%c8_52, %c0_53] : memref<16x32xf32, #tpu.memory_space<vmem>>, vector<8x8xf32>
    tpu.vector_store %arg6[%c8_52, %c0_53], %220 {strides = array<i32>} : memref<16x32xf32, #tpu.memory_space<vmem>>, vector<8x8xf32>,
    %222 = vector.extract_strided_slice %165 {offsets = [0, 8], sizes = [8, 4], strides = [1, 1]} : vector<8x64xf32> to vector<8x4xf32>
    %223 = vector.extract_strided_slice %165 {offsets = [0, 12], sizes = [8, 4], strides = [1, 1]} : vector<8x64xf32> to vector<8x4xf32>
    %224 = arith.mulf %222, %163 : vector<8x4xf32>
    %225 = arith.mulf %223, %164 : vector<8x4xf32>
    %226 = arith.subf %224, %225 : vector<8x4xf32>
    %227 = arith.mulf %223, %163 : vector<8x4xf32>
    %228 = arith.mulf %222, %164 : vector<8x4xf32>
    %229 = arith.addf %227, %228 : vector<8x4xf32>
    %cst_54 = arith.constant 0.353553385 : f32
    %230 = vector.broadcast %cst_54 : f32 to vector<8x4xf32>
    %231 = arith.mulf %226, %230 : vector<8x4xf32>
    %cst_55 = arith.constant 0.353553385 : f32
    %232 = vector.broadcast %cst_55 : f32 to vector<8x4xf32>
    %233 = arith.mulf %229, %232 : vector<8x4xf32>
    %234 = arith.truncf %231 : vector<8x4xf32> to vector<8x4xbf16>
    %235 = arith.truncf %233 : vector<8x4xf32> to vector<8x4xbf16>
    %cst_56 = arith.constant dense<0.000000e+00> : vector<8x8xf32>
    %236 = tpu.matmul %234, %174, %cst_56 {dimension_numbers = #tpu.dot_dimension_numbers<[1], [1], [0], [0], [0, 0, 1, 0], [], []>} : vector<8x4xbf16>, vector<8x4xbf16>, vector<8x8xf32> -> vector<8x8xf32>
    %cst_57 = arith.constant dense<0.000000e+00> : vector<8x8xf32>
    %237 = tpu.matmul %235, %175, %cst_57 {dimension_numbers = #tpu.dot_dimension_numbers<[1], [1], [0], [0], [0, 0, 1, 0], [], []>} : vector<8x4xbf16>, vector<8x4xbf16>, vector<8x8xf32> -> vector<8x8xf32>
    %238 = arith.addf %236, %237 : vector<8x8xf32>
    %cst_58 = arith.constant -1.000000e+30 : f32
    %239 = vector.broadcast %cst_58 : f32 to vector<8x8xf32>
    %240 = arith.select %7, %238, %239 : vector<8x8xi1>, vector<8x8xf32>
    %cst_59 = arith.constant dense<0xFF800000> : vector<8xf32>
    %241 = vector.multi_reduction <maximumf>, %240, %cst_59 [1] : vector<8x8xf32> to vector<8xf32>
    %242 = vector.shape_cast %241 : vector<8xf32> to vector<8x1xf32>
    %243 = vector.broadcast %242 : vector<8x1xf32> to vector<8x8xf32>
    %244 = arith.subf %240, %243 : vector<8x8xf32>
    %245 = math.exp %244 : vector<8x8xf32>
    %cst_60 = arith.constant dense<0.000000e+00> : vector<8xf32>
    %246 = vector.multi_reduction <add>, %245, %cst_60 [1] : vector<8x8xf32> to vector<8xf32>
    %247 = vector.shape_cast %246 : vector<8xf32> to vector<8x1xf32>
    %248 = tpu.reciprocal %247 {approx = true} : vector<8x1xf32> -> vector<8x1xf32>
    %249 = vector.broadcast %248 : vector<8x1xf32> to vector<8x8xf32>
    %250 = arith.mulf %245, %249 : vector<8x8xf32>
    %251 = arith.truncf %250 : vector<8x8xf32> to vector<8x8xbf16>
    %cst_61 = arith.constant dense<0.000000e+00> : vector<8x8xf32>
    %252 = tpu.matmul %251, %177, %cst_61 {dimension_numbers = #tpu.dot_dimension_numbers<[1], [0], [0], [1], [0, 0, 1, 1], [], []>} : vector<8x8xbf16>, vector<8x8xbf16>, vector<8x8xf32> -> vector<8x8xf32>
    %c8_62 = arith.constant 8 : index
    %c8_63 = arith.constant 8 : index
    %253 = vector.load %arg6[%c8_62, %c8_63] : memref<16x32xf32, #tpu.memory_space<vmem>>, vector<8x8xf32>
    tpu.vector_store %arg6[%c8_62, %c8_63], %252 {strides = array<i32>} : memref<16x32xf32, #tpu.memory_space<vmem>>, vector<8x8xf32>,
    %254 = vector.extract_strided_slice %165 {offsets = [0, 16], sizes = [8, 4], strides = [1, 1]} : vector<8x64xf32> to vector<8x4xf32>
    %255 = vector.extract_strided_slice %165 {offsets = [0, 20], sizes = [8, 4], strides = [1, 1]} : vector<8x64xf32> to vector<8x4xf32>
    %256 = arith.mulf %254, %163 : vector<8x4xf32>
    %257 = arith.mulf %255, %164 : vector<8x4xf32>
    %258 = arith.subf %256, %257 : vector<8x4xf32>
    %259 = arith.mulf %255, %163 : vector<8x4xf32>
    %260 = arith.mulf %254, %164 : vector<8x4xf32>
    %261 = arith.addf %259, %260 : vector<8x4xf32>
    %cst_64 = arith.constant 0.353553385 : f32
    %262 = vector.broadcast %cst_64 : f32 to vector<8x4xf32>
    %263 = arith.mulf %258, %262 : vector<8x4xf32>
    %cst_65 = arith.constant 0.353553385 : f32
    %264 = vector.broadcast %cst_65 : f32 to vector<8x4xf32>
    %265 = arith.mulf %261, %264 : vector<8x4xf32>
    %266 = arith.truncf %263 : vector<8x4xf32> to vector<8x4xbf16>
    %267 = arith.truncf %265 : vector<8x4xf32> to vector<8x4xbf16>
    %cst_66 = arith.constant dense<0.000000e+00> : vector<8x8xf32>
    %268 = tpu.matmul %266, %186, %cst_66 {dimension_numbers = #tpu.dot_dimension_numbers<[1], [1], [0], [0], [0, 0, 1, 0], [], []>} : vector<8x4xbf16>, vector<8x4xbf16>, vector<8x8xf32> -> vector<8x8xf32>
    %cst_67 = arith.constant dense<0.000000e+00> : vector<8x8xf32>
    %269 = tpu.matmul %267, %187, %cst_67 {dimension_numbers = #tpu.dot_dimension_numbers<[1], [1], [0], [0], [0, 0, 1, 0], [], []>} : vector<8x4xbf16>, vector<8x4xbf16>, vector<8x8xf32> -> vector<8x8xf32>
    %270 = arith.addf %268, %269 : vector<8x8xf32>
    %cst_68 = arith.constant -1.000000e+30 : f32
    %271 = vector.broadcast %cst_68 : f32 to vector<8x8xf32>
    %272 = arith.select %7, %270, %271 : vector<8x8xi1>, vector<8x8xf32>
    %cst_69 = arith.constant dense<0xFF800000> : vector<8xf32>
    %273 = vector.multi_reduction <maximumf>, %272, %cst_69 [1] : vector<8x8xf32> to vector<8xf32>
    %274 = vector.shape_cast %273 : vector<8xf32> to vector<8x1xf32>
    %275 = vector.broadcast %274 : vector<8x1xf32> to vector<8x8xf32>
    %276 = arith.subf %272, %275 : vector<8x8xf32>
    %277 = math.exp %276 : vector<8x8xf32>
    %cst_70 = arith.constant dense<0.000000e+00> : vector<8xf32>
    %278 = vector.multi_reduction <add>, %277, %cst_70 [1] : vector<8x8xf32> to vector<8xf32>
    %279 = vector.shape_cast %278 : vector<8xf32> to vector<8x1xf32>
    %280 = tpu.reciprocal %279 {approx = true} : vector<8x1xf32> -> vector<8x1xf32>
    %281 = vector.broadcast %280 : vector<8x1xf32> to vector<8x8xf32>
    %282 = arith.mulf %277, %281 : vector<8x8xf32>
    %283 = arith.truncf %282 : vector<8x8xf32> to vector<8x8xbf16>
    %cst_71 = arith.constant dense<0.000000e+00> : vector<8x8xf32>
    %284 = tpu.matmul %283, %189, %cst_71 {dimension_numbers = #tpu.dot_dimension_numbers<[1], [0], [0], [1], [0, 0, 1, 1], [], []>} : vector<8x8xbf16>, vector<8x8xbf16>, vector<8x8xf32> -> vector<8x8xf32>
    %c8_72 = arith.constant 8 : index
    %c16_73 = arith.constant 16 : index
    %285 = vector.load %arg6[%c8_72, %c16_73] : memref<16x32xf32, #tpu.memory_space<vmem>>, vector<8x8xf32>
    tpu.vector_store %arg6[%c8_72, %c16_73], %284 {strides = array<i32>} : memref<16x32xf32, #tpu.memory_space<vmem>>, vector<8x8xf32>,
    %286 = vector.extract_strided_slice %165 {offsets = [0, 24], sizes = [8, 4], strides = [1, 1]} : vector<8x64xf32> to vector<8x4xf32>
    %287 = vector.extract_strided_slice %165 {offsets = [0, 28], sizes = [8, 4], strides = [1, 1]} : vector<8x64xf32> to vector<8x4xf32>
    %288 = arith.mulf %286, %163 : vector<8x4xf32>
    %289 = arith.mulf %287, %164 : vector<8x4xf32>
    %290 = arith.subf %288, %289 : vector<8x4xf32>
    %291 = arith.mulf %287, %163 : vector<8x4xf32>
    %292 = arith.mulf %286, %164 : vector<8x4xf32>
    %293 = arith.addf %291, %292 : vector<8x4xf32>
    %cst_74 = arith.constant 0.353553385 : f32
    %294 = vector.broadcast %cst_74 : f32 to vector<8x4xf32>
    %295 = arith.mulf %290, %294 : vector<8x4xf32>
    %cst_75 = arith.constant 0.353553385 : f32
    %296 = vector.broadcast %cst_75 : f32 to vector<8x4xf32>
    %297 = arith.mulf %293, %296 : vector<8x4xf32>
    %298 = arith.truncf %295 : vector<8x4xf32> to vector<8x4xbf16>
    %299 = arith.truncf %297 : vector<8x4xf32> to vector<8x4xbf16>
    %cst_76 = arith.constant dense<0.000000e+00> : vector<8x8xf32>
    %300 = tpu.matmul %298, %186, %cst_76 {dimension_numbers = #tpu.dot_dimension_numbers<[1], [1], [0], [0], [0, 0, 1, 0], [], []>} : vector<8x4xbf16>, vector<8x4xbf16>, vector<8x8xf32> -> vector<8x8xf32>
    %cst_77 = arith.constant dense<0.000000e+00> : vector<8x8xf32>
    %301 = tpu.matmul %299, %187, %cst_77 {dimension_numbers = #tpu.dot_dimension_numbers<[1], [1], [0], [0], [0, 0, 1, 0], [], []>} : vector<8x4xbf16>, vector<8x4xbf16>, vector<8x8xf32> -> vector<8x8xf32>
    %302 = arith.addf %300, %301 : vector<8x8xf32>
    %cst_78 = arith.constant -1.000000e+30 : f32
    %303 = vector.broadcast %cst_78 : f32 to vector<8x8xf32>
    %304 = arith.select %7, %302, %303 : vector<8x8xi1>, vector<8x8xf32>
    %cst_79 = arith.constant dense<0xFF800000> : vector<8xf32>
    %305 = vector.multi_reduction <maximumf>, %304, %cst_79 [1] : vector<8x8xf32> to vector<8xf32>
    %306 = vector.shape_cast %305 : vector<8xf32> to vector<8x1xf32>
    %307 = vector.broadcast %306 : vector<8x1xf32> to vector<8x8xf32>
    %308 = arith.subf %304, %307 : vector<8x8xf32>
    %309 = math.exp %308 : vector<8x8xf32>
    %cst_80 = arith.constant dense<0.000000e+00> : vector<8xf32>
    %310 = vector.multi_reduction <add>, %309, %cst_80 [1] : vector<8x8xf32> to vector<8xf32>
    %311 = vector.shape_cast %310 : vector<8xf32> to vector<8x1xf32>
    %312 = tpu.reciprocal %311 {approx = true} : vector<8x1xf32> -> vector<8x1xf32>
    %313 = vector.broadcast %312 : vector<8x1xf32> to vector<8x8xf32>
    %314 = arith.mulf %309, %313 : vector<8x8xf32>
    %315 = arith.truncf %314 : vector<8x8xf32> to vector<8x8xbf16>
    %cst_81 = arith.constant dense<0.000000e+00> : vector<8x8xf32>
    %316 = tpu.matmul %315, %189, %cst_81 {dimension_numbers = #tpu.dot_dimension_numbers<[1], [0], [0], [1], [0, 0, 1, 1], [], []>} : vector<8x8xbf16>, vector<8x8xbf16>, vector<8x8xf32> -> vector<8x8xf32>
    %c8_82 = arith.constant 8 : index
    %c24_83 = arith.constant 24 : index
    %317 = vector.load %arg6[%c8_82, %c24_83] : memref<16x32xf32, #tpu.memory_space<vmem>>, vector<8x8xf32>
    tpu.vector_store %arg6[%c8_82, %c24_83], %316 {strides = array<i32>} : memref<16x32xf32, #tpu.memory_space<vmem>>, vector<8x8xf32>,
    %c0_84 = arith.constant 0 : index
    %c0_85 = arith.constant 0 : index
    %318 = vector.load %arg6[%c0_84, %c0_85] : memref<16x32xf32, #tpu.memory_space<vmem>>, vector<16x32xf32>
    %319 = arith.truncf %318 : vector<16x32xf32> to vector<16x32xbf16>
    %c0_86 = arith.constant 0 : index
    %c0_87 = arith.constant 0 : index
    %320 = vector.load %arg2[%c0_86, %c0_87] : memref<32x32xbf16, #tpu.memory_space<vmem>>, vector<32x32xbf16>
    %cst_88 = arith.constant dense<0.000000e+00> : vector<16x32xf32>
    %321 = tpu.matmul %319, %320, %cst_88 {dimension_numbers = #tpu.dot_dimension_numbers<[1], [0], [0], [1], [0, 0, 1, 1], [], []>} : vector<16x32xbf16>, vector<32x32xbf16>, vector<16x32xf32> -> vector<16x32xf32>
    %c0_89 = arith.constant 0 : index
    %c0_90 = arith.constant 0 : index
    %322 = vector.load %arg5[%c0_89, %c0_90] : memref<16x32xf32, #tpu.memory_space<vmem>>, vector<16x32xf32>
    tpu.vector_store %arg5[%c0_89, %c0_90], %321 {strides = array<i32>} : memref<16x32xf32, #tpu.memory_space<vmem>>, vector<16x32xf32>,
    return
  }
}

</mosaic_0001>

<bundles_post_ra>
// kernel: tpu_custom_call.1
= control target key start
LH: loop header
LB: loop body
LE: loop exit
PB: predicated region body
PF: predicated region fallthrough
CT: control target
= control target key end

     0   :  { %v2178_v1 = vmov 0.0   ;;  %vm2179_vm0 = vmmov 0   ;;  %s2181_s26 = smov 36   ;;  %s2696_s0 = inlined_call_operand.vmem [shape: bf16[16,32], index: 0, kind: input, shape index: {}]   ;;  %s2697_s1 = inlined_call_operand.vmem [shape: bf16[32,64], index: 1, kind: input, shape index: {}]   ;;  %s2698_s2 = inlined_call_operand.vmem [shape: bf16[32,32], index: 2, kind: input, shape index: {}]   ;;  %s2699_s3 = inlined_call_operand.vmem [shape: f32[16,4], index: 3, kind: input, shape index: {}]   ;;  %s2700_s4 = inlined_call_operand.vmem [shape: f32[16,4], index: 4, kind: input, shape index: {}]   ;;  %s2701_s5 = inlined_call_operand.hbm [shape: f32[16,32], index: 5, kind: output, shape index: {}]  }
   0x1   :  { %v2117_v0 = vld [vmem:[%s2697_s1] sm:$0xff]   ;;  %1897 = vmatprep.subr.bf16.mxu0 %v2178_v1  ;;  %1905 = vmatprep.subr.bf16.mxu1 %v2178_v1  ;;  %v2118_v2 = vld [vmem:[%s2697_s1 + $0x8] sm:$0xff]   ;;  %s2180_s1 = smov 32  }
   0x2   :  { %1898 = vmatpush3.bf16.msra.mxu0 %v2117_v0  ;;  %1901 = vmatprep.mubr.msk.bf16.mxu0 %vm2179_vm0, %v2178_v1  ;;  %v2250_v3 = vld [vmem:[%s2700_s4] sm:$0xff] }
   0x3   :  { %1899 = vmatprep.subr.bf16.mxu0 %v2178_v1  ;;  %v2255_v4 = vld [vmem:[%s2699_s3] sm:$0xff]  ;;  %1907 = vmatprep.mubr.msk.bf16.mxu1 %vm2179_vm0, %v2178_v1 }
   0x4   :  { %118 = vrot.lane.b32.xlu0 %v2250_v3, %s2180_s1  ;;  %114 = vrot.lane.b32.xlu1 %v2255_v4, %s2181_s26  ;;  %v2119_v5 = vld [vmem:[%s2696_s0] sm:$0xff]  }
   0x5   :  { %10 = vsyncpa [#allocation4], 0  ;;  %vm45_vm1 = vcmask 261120   ;;  %s2182_s29 = smov 4   ;;  %s2183_s0 = smov 124   ;;  %vm188_vm2 = vcmask 31744   ;;  %v94_v47 = vlaneseq }
   0x6   :  { %1900 = vmatpush3.bf16.msra.mxu0 %v2118_v2  ;;  %s2184_s30 = smov 92   ;;  %s2185_s6 = smov 96   ;;  %vm285_vm4 = vcmask 64512   ;;  %vm304_vm5 = vcmask 1043456   ;;  %vm531_vm6 = vcmask 130112   ;;  %vm732_vm7 = vcmask 195712  }
   0x7   :  { %1917 = vmatprep.subr.bf16.mxu0 %v2178_v1  ;;  %s2186_s7 = smov 8   ;;  %s2187_s8 = smov 12   ;;  %v95_v48 = vshrl.u32 %v94_v47, 7  ;;  %v97_v49 = vand.u32 127, %v94_v47  ;;  %vm916_vm8 = vcmask 261312  }
   0x8   :  { %105 = vrot.lane.b32.xlu0 %v2250_v3, %s2181_s26  ;;  %s2188_s9 = smov 80   ;;  %s2189_s10 = smov 116  }
   0x9   :  { %1902 = vmatmul.mubr.msk.bf16.vlgmr.msra.gmra.mrb[0].mxu0 %vm45_vm1, %v2119_v5  ;;  %vm2327_vm3 = vcmp.le.s32.totalorder %v97_v49, %v95_v48  ;;  %s2190_s11 = smov 120   ;;  %s2191_s12 = smov 40  }
   0xa   :  { %1919 = vmatprep.mubr.msk.bf16.mxu0 %vm2179_vm0, %v2178_v1  ;;  %s2192_s13 = smov 16   ;;  %s2193_s14 = smov 44  }
   0xb   :  { %s2194_s15 = smov 20   ;;  %s2195_s16 = smov 84  }
   0xc   :  { %168 = vrot.lane.b32.xlu0 %v2255_v4, %s2182_s29  ;;  %s2196_s17 = smov 108   ;;  %s2197_s18 = smov 88  }
   0xd   :  { %s2198_s19 = smov 112   ;;  %s2199_s20 = smov 24  }
   0xe   :  { %s2200_s21 = smov 28   ;;  %s2201_s22 = smov 72  }
   0xf   :  { %s2702_s23 = smov 100   ;;  %s2203_s24 = smov 104  }
  0x10   :  { %100 = vrot.lane.b32.xlu0 %v2255_v4, %s2180_s1 }
  0x14   :  { %159 = vrot.lane.b32.xlu0 %v2250_v3, %s2182_s29 }
  0x76   :  { %v119_v6 = vpop.permute.xlu0 %118  ;;  %v115_v15 = vpop.permute.xlu1 %114 }
  0x7a   :  { %v106_v13 = vpop.permute.xlu0 %105 }
  0x7e   :  { %v169_v16 = vpop.permute.xlu0 %168 }
  0x82   :  { %v101_v22 = vpop.permute.xlu0 %100 }
  0x86   :  { %v160_v30 = vpop.permute.xlu0 %159 }
  0xdc   :  { %v2278_v7 = vpop.f32.mrb[0].mxu0 }
  0xdd   :  { %v1903_v8 = vpop.f32.mrb[1].mxu0  ;;  %v121_v9 = vmul.f32 %v119_v6, %v2278_v7  ;;  %v172_v12 = vmul.f32 %v2250_v3, %v2278_v7  ;;  %v108_v14 = vmul.f32 %v106_v13, %v2278_v7  ;;  %v117_v17 = vmul.f32 %v115_v15, %v2278_v7 }
  0xde   :  { %v2281_v10 = vpop.f32.mrb[2].mxu0  ;;  %v171_v21 = vmul.f32 %v169_v16, %v2278_v7  ;;  %v103_v26 = vmul.f32 %v101_v22, %v2278_v7  ;;  %v162_v32 = vmul.f32 %v160_v30, %v2278_v7  ;;  %v158_v38 = vmul.f32 %v2255_v4, %v2278_v7 }
  0xdf   :  { %123 = vrot.lane.b32.xlu1 %v121_v9, %s2182_s29  ;;  %v1904_v11 = vpop.f32.mrb[3].mxu0  ;;  %v2338_v5 = vpack.c.bf16 %v2278_v7, %v2278_v7 }
  0xe3   :  { %174 = vrot.lane.b32.xlu1 %v172_v12, %s2182_s29 }
  0xe7   :  { %110 = vrot.lane.b32.xlu1 %v108_v14, %s2183_s0 }
 0x151   :  { %v124_v18 = vpop.permute.xlu1 %123 }
 0x152   :  { %v126_v19 = vadd.f32 %v124_v18, %v117_v17 }
 0x154   :  { %v128_v20 = vpack.c.bf16 %v126_v19, %v126_v19 }
 0x155   :  { %v175_v23 = vpop.permute.xlu1 %174 }
 0x156   :  { %v177_v24 = vadd.f32 %v175_v23, %v171_v21  ;;  %186 = vrot.lane.b32.xlu1 %v128_v20, %s2184_s30 }
 0x158   :  { %v179_v25 = vmul.f32 0.35355338, %v177_v24 }
 0x159   :  { %v111_v27 = vpop.permute.xlu1 %110 }
 0x15a   :  { %v181_v28 = vpack.c.bf16 %v179_v25, %v179_v25  ;;  %v113_v29 = vsub.f32 %v103_v26, %v111_v27 }
 0x15c   :  { %v127_v31 = vpack.c.bf16 %v113_v29, %v113_v29  ;;  %183 = vrot.lane.b32.xlu0 %v181_v28, %s2183_s0 }
 0x15e   :  { %236 = vrot.lane.b32.xlu1 %v127_v31, %s2185_s6 }
 0x160   :  { %164 = vrot.lane.b32.xlu0 %v162_v32, %s2183_s0 }
 0x164   :  { %366 = vrot.lane.b32.xlu0 %v2250_v3, %s2186_s7 }
 0x168   :  { %353 = vrot.lane.b32.xlu0 %v2250_v3, %s2187_s8 }
 0x16c   :  { %362 = vrot.lane.b32.xlu0 %v2255_v4, %s2187_s8 }
 0x1c8   :  { %v187_v33 = vpop.permute.xlu1 %186 }
 0x1c9   :  { %v2304_v34 = vsel %vm188_vm2, %v187_v33, 0 }
 0x1ca   :  { %1906 = vmatpush3.bf16.xpose.msra.mxu1 %v2304_v34 }
 0x1cb   :  { %1911 = vmatprep.subr.bf16.mxu1 %v2178_v1 }
 0x1ce   :  { %v184_v35 = vpop.permute.xlu0 %183 }
 0x1d0   :  { %v237_v36 = vpop.permute.xlu1 %236 }
 0x1d1   :  { %v2309_v37 = vsel %vm188_vm2, %v237_v36, 0  ;;  %1908 = vmatmul.mubr.msk.bf16.vlgmr.msra.gmra.mrb[0].mxu1 %vm188_vm2, %v184_v35 }
 0x1d2   :  { %v165_v39 = vpop.permute.xlu0 %164  ;;  %1912 = vmatpush3.bf16.xpose.msra.mxu1 %v2309_v37  ;;  %1913 = vmatprep.mubr.msk.bf16.mxu1 %vm2179_vm0, %v2178_v1 }
 0x1d3   :  { %v167_v40 = vsub.f32 %v158_v38, %v165_v39  ;;  %1935 = vmatprep.subr.bf16.mxu1 %v2178_v1 }
 0x1d5   :  { %v178_v42 = vmul.f32 0.35355338, %v167_v40 }
 0x1d6   :  { %v367_v41 = vpop.permute.xlu0 %366 }
 0x1d7   :  { %v369_v43 = vmul.f32 %v367_v41, %v2278_v7  ;;  %v180_v44 = vpack.c.bf16 %v178_v42, %v178_v42 }
 0x1d9   :  { %371 = vrot.lane.b32.xlu0 %v369_v43, %s2182_s29 }
 0x1da   :  { %v354_v45 = vpop.permute.xlu0 %353 }
 0x1db   :  { %v356_v46 = vmul.f32 %v354_v45, %v2278_v7 }
 0x1dd   :  { %349 = vrot.lane.b32.xlu0 %v2255_v4, %s2186_s7  ;;  %1914 = vmatmul.mubr.msk.bf16.vlgmr.msra.gmra.mrb[0].mxu1 %vm188_vm2, %v180_v44 }
 0x1de   :  { %1937 = vmatprep.mubr.msk.bf16.mxu1 %vm2179_vm0, %v2178_v1  ;;  %v363_v51 = vpop.permute.xlu0 %362 }
 0x1df   :  { %v365_v60 = vmul.f32 %v363_v51, %v2278_v7 }
 0x1e1   :  { %358 = vrot.lane.b32.xlu0 %v356_v46, %s2183_s0 }
 0x24b   :  { %v372_v57 = vpop.permute.xlu0 %371 }
 0x24c   :  { %v374_v61 = vadd.f32 %v372_v57, %v365_v60 }
 0x24e   :  { %v376_v0 = vmul.f32 0.35355338, %v374_v61 }
 0x24f   :  { %v350_v59 = vpop.permute.xlu0 %349 }
 0x250   :  { %v352_v63 = vmul.f32 %v350_v59, %v2278_v7  ;;  %v378_v6 = vpack.c.bf16 %v376_v0, %v376_v0 }
 0x253   :  { %v359_v62 = vpop.permute.xlu0 %358 }
 0x254   :  { %v361_v2 = vsub.f32 %v352_v63, %v359_v62 }
 0x256   :  { %v375_v8 = vmul.f32 0.35355338, %v361_v2 }
 0x258   :  { %v377_v9 = vpack.c.bf16 %v375_v8, %v375_v8 }
 0x2b0   :  { %v278_v52 = vpop.f32.mrb[0].mxu1 }
 0x2b1   :  { %v284_v53 = vsel %vm2327_vm3, %v278_v52, -1e+30  ;;  %v1915_v54 = vpop.f32.mrb[1].mxu1 }
 0x2b2   :  { %v281_v55 = vpop.f32.mrb[2].mxu1  ;;  %v286_v56 = vsel %vm285_vm4, %v284_v53, -inf }
 0x2b3   :  { %287 = vmax.xlane.f32.xlu1 %v286_v56  ;;  %v1916_v58 = vpop.f32.mrb[3].mxu1 }
 0x2c4   :  { %299 = vrot.lane.b32.xlu1 %v2338_v5, %s2188_s9 }
 0x2c8   :  { %380 = vrot.lane.b32.xlu1 %v378_v6, %s2189_s10 }
 0x2cc   :  { %426 = vrot.lane.b32.xlu1 %v377_v9, %s2190_s11 }
 0x340   :  { %v288_v11 = vpop.xlane.xlu1 %287 }
 0x341   :  { %v289_v12 = vsub.f32 %v284_v53, %v288_v11 }
 0x343   :  { %v290_v13 = vmul.f32 1.442695, %v289_v12 }
 0x344   :  { %v300_v14 = vpop.permute.xlu1 %299 }
 0x345   :  { %2122 = vpow2.f32 %v290_v13  ;;  %v306_v15 = vsel %vm304_vm5, %v300_v14, 0 }
 0x346   :  { %1918 = vmatpush3.bf16.msra.mxu0 %v306_v15  ;;  %1936 = vmatpush3.bf16.msra.mxu1 %v306_v15 }
 0x347   :  { %1923 = vmatprep.subr.bf16.mxu0 %v2178_v1  ;;  %1941 = vmatprep.subr.bf16.mxu1 %v2178_v1 }
 0x348   :  { %v381_v28 = vpop.permute.xlu1 %380 }
 0x34c   :  { %v427_v29 = vpop.permute.xlu1 %426 }
 0x34f   :  { %v2123_v16 = vpop.eup %2122 }
 0x350   :  { %v292_v17 = vsel %vm285_vm4, %v2123_v16, 0.0 }
 0x351   :  { %293 = vadd.xlane.f32.xlu0 %v292_v17 }
 0x367   :  { %147 = vrot.lane.b32.xlu0 %v2250_v3, %s2191_s12 }
 0x36b   :  { %550 = vrot.lane.b32.xlu0 %v2250_v3, %s2192_s13 }
 0x36f   :  { %134 = vrot.lane.b32.xlu0 %v2250_v3, %s2193_s14 }
 0x373   :  { %537 = vrot.lane.b32.xlu0 %v2250_v3, %s2194_s15 }
 0x377   :  { %143 = vrot.lane.b32.xlu0 %v2255_v4, %s2193_s14 }
 0x3de   :  { %v294_v18 = vpop.xlane.xlu0 %293 }
 0x3df   :  { %2124 = vrcp.f32 %v294_v18 }
 0x3e2   :  { %v148_v19 = vpop.permute.xlu0 %147 }
 0x3e3   :  { %v150_v20 = vmul.f32 %v148_v19, %v2278_v7 }
 0x3e5   :  { %152 = vrot.lane.b32.xlu0 %v150_v20, %s2182_s29 }
 0x3e6   :  { %v551_v21 = vpop.permute.xlu0 %550 }
 0x3e7   :  { %v553_v22 = vmul.f32 %v551_v21, %v2278_v7 }
 0x3e9   :  { %v2125_v23 = vpop.eup %2124  ;;  %555 = vrot.lane.b32.xlu0 %v553_v22, %s2182_s29 }
 0x3ea   :  { %v296_v24 = vmul.f32 %v2125_v23, %v2123_v16  ;;  %v135_v25 = vpop.permute.xlu0 %134 }
 0x3eb   :  { %v137_v27 = vmul.f32 %v135_v25, %v2278_v7 }
 0x3ec   :  { %v297_v26 = vpack.c.bf16 %v296_v24, %v296_v24 }
 0x3ed   :  { %130 = vrot.lane.b32.xlu0 %v2255_v4, %s2191_s12 }
 0x3ee   :  { %1920 = vmatmul.mubr.msk.bf16.vlgmr.msra.gmra.mrb[4].mxu0 %vm285_vm4, %v297_v26  ;;  %v538_v40 = vpop.permute.xlu0 %537 }
 0x3ef   :  { %1924 = vmatpush3.bf16.xpose.msra.mxu0 %v2304_v34  ;;  %1925 = vmatprep.mubr.msk.bf16.mxu0 %vm2179_vm0, %v2178_v1  ;;  %v540_v44 = vmul.f32 %v538_v40, %v2278_v7 }
 0x3f0   :  { %1929 = vmatprep.subr.bf16.mxu0 %v2178_v1 }
 0x3f1   :  { %139 = vrot.lane.b32.xlu0 %v137_v27, %s2183_s0 }
 0x3f2   :  { %v144_v41 = vpop.permute.xlu0 %143 }
 0x3f3   :  { %v146_v43 = vmul.f32 %v144_v41, %v2278_v7 }
 0x3f5   :  { %533 = vrot.lane.b32.xlu0 %v2255_v4, %s2192_s13 }
 0x3f6   :  { %1926 = vmatmul.mubr.msk.bf16.vlgmr.msra.gmra.mrb[8].mxu0 %vm188_vm2, %v381_v28 }
 0x3f7   :  { %1930 = vmatpush3.bf16.xpose.msra.mxu0 %v2309_v37  ;;  %1931 = vmatprep.mubr.msk.bf16.mxu0 %vm2179_vm0, %v2178_v1 }
 0x3f8   :  { %1953 = vmatprep.subr.bf16.mxu0 %v2178_v1 }
 0x402   :  { %1932 = vmatmul.mubr.msk.bf16.vlgmr.msra.gmra.mrb[8].mxu0 %vm188_vm2, %v427_v29 }
 0x403   :  { %1955 = vmatprep.mubr.msk.bf16.mxu0 %vm2179_vm0, %v2178_v1 }
 0x457   :  { %v153_v42 = vpop.permute.xlu0 %152 }
 0x458   :  { %v155_v45 = vadd.f32 %v153_v42, %v146_v43 }
 0x45a   :  { %v157_v46 = vpack.c.bf16 %v155_v45, %v155_v45 }
 0x45b   :  { %v556_v47 = vpop.permute.xlu0 %555 }
 0x45f   :  { %v131_v48 = vpop.permute.xlu0 %130 }
 0x460   :  { %v133_v59 = vmul.f32 %v131_v48, %v2278_v7 }
 0x463   :  { %v140_v49 = vpop.permute.xlu0 %139 }
 0x464   :  { %v142_v62 = vsub.f32 %v133_v59, %v140_v49 }
 0x466   :  { %v156_v6 = vpack.c.bf16 %v142_v62, %v142_v62 }
 0x467   :  { %v534_v56 = vpop.permute.xlu0 %533 }
 0x468   :  { %v536_v60 = vmul.f32 %v534_v56, %v2278_v7 }
 0x4c1   :  { %v342_v30 = vpop.f32.mrb[4].mxu0 }
 0x4c2   :  { %348 = vst.msk [vmem:[#allocation2] sm:$0xff] %vm285_vm4, %v342_v30  ;;  %v1921_v31 = vpop.f32.mrb[5].mxu0 }
 0x4c3   :  { %v345_v32 = vpop.f32.mrb[6].mxu0 }
 0x4c4   :  { %v1922_v33 = vpop.f32.mrb[7].mxu0 }
 0x4d5   :  { %v465_v34 = vpop.f32.mrb[8].mxu0 }
 0x4d6   :  { %v471_v35 = vsel %vm2327_vm3, %v465_v34, -1e+30  ;;  %v1933_v36 = vpop.f32.mrb[9].mxu0 }
 0x4d7   :  { %v468_v37 = vpop.f32.mrb[10].mxu0  ;;  %v472_v38 = vsel %vm285_vm4, %v471_v35, -inf }
 0x4d8   :  { %473 = vmax.xlane.f32.xlu1 %v472_v38  ;;  %v1934_v39 = vpop.f32.mrb[11].mxu0 }
 0x4e9   :  { %546 = vrot.lane.b32.xlu1 %v2255_v4, %s2194_s15 }
 0x4ed   :  { %542 = vrot.lane.b32.xlu1 %v540_v44, %s2183_s0 }
 0x4f1   :  { %567 = vrot.lane.b32.xlu1 %v157_v46, %s2195_s16 }
 0x565   :  { %v474_v51 = vpop.xlane.xlu1 %473 }
 0x566   :  { %v475_v52 = vsub.f32 %v471_v35, %v474_v51 }
 0x568   :  { %v476_v53 = vmul.f32 1.442695, %v475_v52  ;;  %v2447_v52 = vld [vmem:[%s2700_s4 + $0x8] sm:$0xff] }
 0x569   :  { %v547_v54 = vpop.permute.xlu1 %546 }
 0x56a   :  { %2126 = vpow2.f32 %v476_v53  ;;  %v549_v55 = vmul.f32 %v547_v54, %v2278_v7  ;;  %v2456_v53 = vld [vmem:[%s2699_s3 + $0x8] sm:$0xff]  ;;  %v991_v54 = vmul.f32 %v2447_v52, %v2281_v10  ;;  %s2705_s3 = smov 100  }
 0x56c   :  { %v558_v57 = vadd.f32 %v556_v47, %v549_v55 }
 0x56d   :  { %v543_v58 = vpop.permute.xlu1 %542 }
 0x56e   :  { %v560_v61 = vmul.f32 0.35355338, %v558_v57  ;;  %v545_v0 = vsub.f32 %v536_v60, %v543_v58 }
 0x570   :  { %v562_v63 = vpack.c.bf16 %v560_v61, %v560_v61  ;;  %v559_v8 = vmul.f32 0.35355338, %v545_v0 }
 0x571   :  { %v568_v17 = vpop.permute.xlu1 %567 }
 0x572   :  { %564 = vrot.lane.b32.xlu1 %v562_v63, %s2196_s17  ;;  %v561_v11 = vpack.c.bf16 %v559_v8, %v559_v8 }
 0x574   :  { %v2127_v2 = vpop.eup %2126 }
 0x575   :  { %v478_v9 = vsel %vm285_vm4, %v2127_v2, 0.0 }
 0x576   :  { %479 = vadd.xlane.f32.xlu0 %v478_v9  ;;  %619 = vrot.lane.b32.xlu1 %v156_v6, %s2197_s18 }
 0x57a   :  { %616 = vrot.lane.b32.xlu1 %v561_v11, %s2198_s19 }
 0x58c   :  { %751 = vrot.lane.b32.xlu0 %v2250_v3, %s2199_s20 }
 0x590   :  { %738 = vrot.lane.b32.xlu0 %v2250_v3, %s2200_s21  ;;  %v2409_v3 = vsel %vm188_vm2, %v568_v17, 0 }
 0x5e4   :  { %v565_v21 = vpop.permute.xlu1 %564 }
 0x5e8   :  { %v620_v22 = vpop.permute.xlu1 %619 }
 0x5e9   :  { %v2417_v23 = vsel %vm188_vm2, %v620_v22, 0 }
 0x5ec   :  { %v617_v24 = vpop.permute.xlu1 %616 }
 0x603   :  { %v480_v12 = vpop.xlane.xlu0 %479 }
 0x604   :  { %2128 = vrcp.f32 %v480_v12 }
 0x607   :  { %v752_v13 = vpop.permute.xlu0 %751 }
 0x608   :  { %v754_v14 = vmul.f32 %v752_v13, %v2278_v7 }
 0x60a   :  { %756 = vrot.lane.b32.xlu0 %v754_v14, %s2182_s29 }
 0x60b   :  { %v739_v15 = vpop.permute.xlu0 %738 }
 0x60c   :  { %v741_v19 = vmul.f32 %v739_v15, %v2278_v7 }
 0x60e   :  { %v2129_v16 = vpop.eup %2128  ;;  %734 = vrot.lane.b32.xlu0 %v2255_v4, %s2199_s20 }
 0x60f   :  { %v482_v18 = vmul.f32 %v2129_v16, %v2127_v2 }
 0x611   :  { %v483_v20 = vpack.c.bf16 %v482_v18, %v482_v18 }
 0x612   :  { %743 = vrot.lane.b32.xlu0 %v741_v19, %s2183_s0 }
 0x613   :  { %1938 = vmatmul.mubr.msk.bf16.vlgmr.msra.gmra.mrb[4].mxu1 %vm285_vm4, %v483_v20 }
 0x614   :  { %1942 = vmatpush3.bf16.xpose.msra.mxu1 %v2409_v3  ;;  %1943 = vmatprep.mubr.msk.bf16.mxu1 %vm2179_vm0, %v2178_v1 }
 0x615   :  { %1947 = vmatprep.subr.bf16.mxu1 %v2178_v1 }
 0x61b   :  { %1944 = vmatmul.mubr.msk.bf16.vlgmr.msra.gmra.mrb[8].mxu1 %vm188_vm2, %v565_v21 }
 0x61c   :  { %1948 = vmatpush3.bf16.xpose.msra.mxu1 %v2417_v23  ;;  %1949 = vmatprep.mubr.msk.bf16.mxu1 %vm2179_vm0, %v2178_v1 }
 0x61d   :  { %1971 = vmatprep.subr.bf16.mxu1 %v2178_v1 }
 0x627   :  { %1950 = vmatmul.mubr.msk.bf16.vlgmr.msra.gmra.mrb[8].mxu1 %vm188_vm2, %v617_v24 }
 0x628   :  { %1973 = vmatprep.mubr.msk.bf16.mxu1 %vm2179_vm0, %v2178_v1 }
 0x67c   :  { %v757_v35 = vpop.permute.xlu0 %756 }
 0x680   :  { %v735_v36 = vpop.permute.xlu0 %734 }
 0x681   :  { %v737_v42 = vmul.f32 %v735_v36, %v2278_v7 }
 0x684   :  { %v744_v40 = vpop.permute.xlu0 %743 }
 0x685   :  { %v746_v44 = vsub.f32 %v737_v42, %v744_v40 }
 0x6e6   :  { %v2427_v25 = vpop.f32.mrb[4].mxu1 }
 0x6e7   :  { %v1939_v26 = vpop.f32.mrb[5].mxu1 }
 0x6e8   :  { %v524_v27 = vpop.f32.mrb[6].mxu1 }
 0x6e9   :  { %v1940_v28 = vpop.f32.mrb[7].mxu1 }
 0x6fa   :  { %v661_v29 = vpop.f32.mrb[8].mxu1 }
 0x6fb   :  { %v667_v30 = vsel %vm2327_vm3, %v661_v29, -1e+30  ;;  %v1951_v31 = vpop.f32.mrb[9].mxu1 }
 0x6fc   :  { %v664_v32 = vpop.f32.mrb[10].mxu1  ;;  %v668_v33 = vsel %vm285_vm4, %v667_v30, -inf }
 0x6fd   :  { %669 = vmax.xlane.f32.xlu1 %v668_v33  ;;  %v1952_v34 = vpop.f32.mrb[11].mxu1 }
 0x70e   :  { %747 = vrot.lane.b32.xlu1 %v2255_v4, %s2200_s21 }
 0x712   :  { %680 = vrot.lane.b32.xlu1 %v2338_v5, %s2201_s22  ;;  %v760_v5 = vmul.f32 0.35355338, %v746_v44 }
 0x714   :  { %v762_v51 = vpack.c.bf16 %v760_v5, %v760_v5 }
 0x78a   :  { %v670_v37 = vpop.xlane.xlu1 %669 }
 0x78b   :  { %v671_v38 = vsub.f32 %v667_v30, %v670_v37 }
 0x78d   :  { %v672_v39 = vmul.f32 1.442695, %v671_v38 }
 0x78e   :  { %v748_v41 = vpop.permute.xlu1 %747 }
 0x78f   :  { %2130 = vpow2.f32 %v672_v39  ;;  %v750_v43 = vmul.f32 %v748_v41, %v2278_v7 }
 0x791   :  { %v759_v45 = vadd.f32 %v757_v35, %v750_v43 }
 0x792   :  { %v681_v46 = vpop.permute.xlu1 %680 }
 0x793   :  { %v761_v4 = vmul.f32 0.35355338, %v759_v45  ;;  %v686_v47 = vsel %vm304_vm5, %v681_v46, 0 }
 0x794   :  { %1954 = vmatpush3.bf16.msra.mxu0 %v686_v47  ;;  %1972 = vmatpush3.bf16.msra.mxu1 %v686_v47 }
 0x795   :  { %v763_v48 = vpack.c.bf16 %v761_v4, %v761_v4  ;;  %1959 = vmatprep.subr.bf16.mxu0 %v2178_v1  ;;  %1977 = vmatprep.subr.bf16.mxu1 %v2178_v1 }
 0x797   :  { %765 = vrot.lane.b32.xlu1 %v763_v48, %s2702_s23 }
 0x799   :  { %v2131_v49 = vpop.eup %2130 }
 0x79a   :  { %v674_v7 = vsel %vm285_vm4, %v2131_v49, 0.0 }
 0x79b   :  { %675 = vadd.xlane.f32.xlu0 %v674_v7  ;;  %811 = vrot.lane.b32.xlu1 %v762_v51, %s2203_s24 }
 0x79f   :  { %937 = vrot.lane.b32.xlu1 %v2447_v52, %s2180_s1 }
 0x7b1   :  { %924 = vrot.lane.b32.xlu0 %v2447_v52, %s2181_s26 }
 0x7b5   :  { %933 = vrot.lane.b32.xlu0 %v2456_v53, %s2181_s26 }
 0x7b9   :  { %987 = vrot.lane.b32.xlu0 %v2456_v53, %s2182_s29 }
 0x7bd   :  { %993 = vrot.lane.b32.xlu0 %v991_v54, %s2182_s29  ;;  %v977_v54 = vmul.f32 %v2456_v53, %v2281_v10 }
 0x7c1   :  { %919 = vrot.lane.b32.xlu0 %v2456_v53, %s2180_s1 }
 0x809   :  { %v766_v61 = vpop.permute.xlu1 %765 }
 0x80d   :  { %v812_v62 = vpop.permute.xlu1 %811 }
 0x811   :  { %v938_v15 = vpop.permute.xlu1 %937 }
 0x812   :  { %v940_v16 = vmul.f32 %v938_v15, %v2281_v10 }
 0x828   :  { %v676_v55 = vpop.xlane.xlu0 %675 }
 0x829   :  { %2132 = vrcp.f32 %v676_v55 }
 0x82c   :  { %v925_v56 = vpop.permute.xlu0 %924 }
 0x82d   :  { %v927_v57 = vmul.f32 %v925_v56, %v2281_v10 }
 0x82f   :  { %929 = vrot.lane.b32.xlu0 %v927_v57, %s2183_s0 }
 0x830   :  { %v934_v17 = vpop.permute.xlu0 %933 }
 0x831   :  { %v936_v22 = vmul.f32 %v934_v17, %v2281_v10 }
 0x833   :  { %v2133_v58 = vpop.eup %2132 }
 0x834   :  { %v678_v59 = vmul.f32 %v2133_v58, %v2131_v49  ;;  %v988_v18 = vpop.permute.xlu0 %987 }
 0x835   :  { %v990_v21 = vmul.f32 %v988_v18, %v2281_v10 }
 0x836   :  { %v679_v60 = vpack.c.bf16 %v678_v59, %v678_v59 }
 0x838   :  { %1956 = vmatmul.mubr.msk.bf16.vlgmr.msra.gmra.mrb[12].mxu0 %vm285_vm4, %v679_v60  ;;  %v994_v19 = vpop.permute.xlu0 %993 }
 0x839   :  { %1960 = vmatpush3.bf16.xpose.msra.mxu0 %v2409_v3  ;;  %1961 = vmatprep.mubr.msk.bf16.mxu0 %vm2179_vm0, %v2178_v1 }
 0x83a   :  { %1965 = vmatprep.subr.bf16.mxu0 %v2178_v1 }
 0x83c   :  { %v920_v26 = vpop.permute.xlu0 %919 }
 0x83d   :  { %v922_v32 = vmul.f32 %v920_v26, %v2281_v10 }
 0x840   :  { %1962 = vmatmul.mubr.msk.bf16.vlgmr.msra.gmra.mrb[16].mxu0 %vm188_vm2, %v766_v61 }
 0x841   :  { %1966 = vmatpush3.bf16.xpose.msra.mxu0 %v2417_v23  ;;  %1967 = vmatprep.mubr.msk.bf16.mxu0 %vm2179_vm0, %v2178_v1  ;;  %v996_v23 = vadd.f32 %v994_v19, %v990_v21 }
 0x842   :  { %1989 = vmatprep.subr.bf16.mxu0 %v2178_v1 }
 0x843   :  { %v998_v29 = vmul.f32 0.35355338, %v996_v23 }
 0x845   :  { %v1000_v33 = vpack.c.bf16 %v998_v29, %v998_v29 }
 0x84c   :  { %1968 = vmatmul.mubr.msk.bf16.vlgmr.msra.gmra.mrb[16].mxu0 %vm188_vm2, %v812_v62 }
 0x84d   :  { %1991 = vmatprep.mubr.msk.bf16.mxu0 %vm2179_vm0, %v2178_v1 }
 0x8a1   :  { %v930_v31 = vpop.permute.xlu0 %929 }
 0x8a2   :  { %v932_v34 = vsub.f32 %v922_v32, %v930_v31 }
 0x8a4   :  { %v946_v36 = vpack.c.bf16 %v932_v34, %v932_v34 }
 0x90b   :  { %v2482_v63 = vpop.f32.mrb[12].mxu0 }
 0x90c   :  { %v1957_v0 = vpop.f32.mrb[13].mxu0 }
 0x90d   :  { %v725_v2 = vpop.f32.mrb[14].mxu0 }
 0x90e   :  { %v1958_v6 = vpop.f32.mrb[15].mxu0 }
 0x91f   :  { %v850_v8 = vpop.f32.mrb[16].mxu0 }
 0x920   :  { %v856_v9 = vsel %vm2327_vm3, %v850_v8, -1e+30  ;;  %v1969_v11 = vpop.f32.mrb[17].mxu0 }
 0x921   :  { %v853_v12 = vpop.f32.mrb[18].mxu0  ;;  %v857_v13 = vsel %vm285_vm4, %v856_v9, -inf  ;;  %v2540_v11 = vpack.c.bf16 %v2281_v10, %v2281_v10 }
 0x922   :  { %858 = vmax.xlane.f32.xlu1 %v857_v13  ;;  %v1970_v14 = vpop.f32.mrb[19].mxu0 }
 0x933   :  { %942 = vrot.lane.b32.xlu1 %v940_v16, %s2182_s29 }
 0x937   :  { %978 = vrot.lane.b32.xlu1 %v2447_v52, %s2182_s29 }
 0x9af   :  { %v859_v20 = vpop.xlane.xlu1 %858 }
 0x9b0   :  { %v860_v3 = vsub.f32 %v856_v9, %v859_v20 }
 0x9b2   :  { %v861_v24 = vmul.f32 1.442695, %v860_v3 }
 0x9b3   :  { %v943_v27 = vpop.permute.xlu1 %942 }
 0x9b4   :  { %2134 = vpow2.f32 %v861_v24  ;;  %v945_v28 = vadd.f32 %v943_v27, %v936_v22 }
 0x9b6   :  { %v947_v30 = vpack.c.bf16 %v945_v28, %v945_v28 }
 0x9b7   :  { %v979_v37 = vpop.permute.xlu1 %978 }
 0x9b8   :  { %1005 = vrot.lane.b32.xlu1 %v947_v30, %s2184_s30  ;;  %v981_v39 = vmul.f32 %v979_v37, %v2281_v10 }
 0x9bc   :  { %1002 = vrot.lane.b32.xlu1 %v1000_v33, %s2183_s0 }
 0x9be   :  { %v2135_v35 = vpop.eup %2134 }
 0x9bf   :  { %v863_v38 = vsel %vm285_vm4, %v2135_v35, 0.0 }
 0x9c0   :  { %864 = vadd.xlane.f32.xlu0 %v863_v38  ;;  %1054 = vrot.lane.b32.xlu1 %v946_v36, %s2185_s6 }
 0x9c4   :  { %983 = vrot.lane.b32.xlu1 %v981_v39, %s2183_s0 }
 0x9d6   :  { %1182 = vrot.lane.b32.xlu0 %v2447_v52, %s2186_s7 }
 0x9da   :  { %1169 = vrot.lane.b32.xlu0 %v2447_v52, %s2187_s8 }
 0xa2a   :  { %v1006_v42 = vpop.permute.xlu1 %1005 }
 0xa2b   :  { %v2511_v48 = vsel %vm188_vm2, %v1006_v42, 0 }
 0xa2e   :  { %v1003_v46 = vpop.permute.xlu1 %1002 }
 0xa32   :  { %v1055_v49 = vpop.permute.xlu1 %1054 }
 0xa33   :  { %v2519_v7 = vsel %vm188_vm2, %v1055_v49, 0 }
 0xa36   :  { %v984_v51 = vpop.permute.xlu1 %983 }
 0xa37   :  { %v986_v55 = vsub.f32 %v977_v54, %v984_v51 }
 0xa39   :  { %v997_v56 = vmul.f32 0.35355338, %v986_v55 }
 0xa3b   :  { %v999_v57 = vpack.c.bf16 %v997_v56, %v997_v56 }
 0xa4d   :  { %v865_v40 = vpop.xlane.xlu0 %864 }
 0xa4e   :  { %2136 = vrcp.f32 %v865_v40 }
 0xa51   :  { %v1183_v41 = vpop.permute.xlu0 %1182 }
 0xa52   :  { %v1185_v43 = vmul.f32 %v1183_v41, %v2281_v10 }
 0xa54   :  { %1187 = vrot.lane.b32.xlu0 %v1185_v43, %s2182_s29 }
 0xa55   :  { %v1170_v44 = vpop.permute.xlu0 %1169 }
 0xa56   :  { %v1172_v47 = vmul.f32 %v1170_v44, %v2281_v10 }
 0xa58   :  { %v2137_v45 = vpop.eup %2136  ;;  %1165 = vrot.lane.b32.xlu0 %v2456_v53, %s2186_s7 }
 0xa59   :  { %v867_v4 = vmul.f32 %v2137_v45, %v2135_v35 }
 0xa5b   :  { %v868_v5 = vpack.c.bf16 %v867_v4, %v867_v4 }
 0xa5c   :  { %1174 = vrot.lane.b32.xlu0 %v1172_v47, %s2183_s0 }
 0xa5d   :  { %1974 = vmatmul.mubr.msk.bf16.vlgmr.msra.gmra.mrb[12].mxu1 %vm285_vm4, %v868_v5 }
 0xa5e   :  { %1978 = vmatpush3.bf16.xpose.msra.mxu1 %v2511_v48  ;;  %1979 = vmatprep.mubr.msk.bf16.mxu1 %vm2179_vm0, %v2178_v1 }
 0xa5f   :  { %1983 = vmatprep.subr.bf16.mxu1 %v2178_v1 }
 0xa65   :  { %1980 = vmatmul.mubr.msk.bf16.vlgmr.msra.gmra.mrb[16].mxu1 %vm188_vm2, %v1003_v46 }
 0xa66   :  { %1984 = vmatpush3.bf16.xpose.msra.mxu1 %v2519_v7  ;;  %1985 = vmatprep.mubr.msk.bf16.mxu1 %vm2179_vm0, %v2178_v1 }
 0xa67   :  { %2007 = vmatprep.subr.bf16.mxu1 %v2178_v1 }
 0xa71   :  { %1986 = vmatmul.mubr.msk.bf16.vlgmr.msra.gmra.mrb[16].mxu1 %vm188_vm2, %v999_v57 }
 0xa72   :  { %2009 = vmatprep.mubr.msk.bf16.mxu1 %vm2179_vm0, %v2178_v1 }
 0xac6   :  { %v1188_v12 = vpop.permute.xlu0 %1187 }
 0xaca   :  { %v1166_v13 = vpop.permute.xlu0 %1165 }
 0xacb   :  { %v1168_v19 = vmul.f32 %v1166_v13, %v2281_v10 }
 0xace   :  { %v1175_v17 = vpop.permute.xlu0 %1174 }
 0xacf   :  { %v1177_v21 = vsub.f32 %v1168_v19, %v1175_v17 }
 0xad1   :  { %v1191_v26 = vmul.f32 0.35355338, %v1177_v21 }
 0xad3   :  { %v1193_v29 = vpack.c.bf16 %v1191_v26, %v1191_v26 }
 0xb30   :  { %v2531_v58 = vpop.f32.mrb[12].mxu1 }
 0xb31   :  { %v1975_v59 = vpop.f32.mrb[13].mxu1 }
 0xb32   :  { %v909_v60 = vpop.f32.mrb[14].mxu1 }
 0xb33   :  { %v1976_v61 = vpop.f32.mrb[15].mxu1 }
 0xb44   :  { %v1096_v62 = vpop.f32.mrb[16].mxu1 }
 0xb45   :  { %v1102_v0 = vsel %vm2327_vm3, %v1096_v62, -1e+30  ;;  %v1987_v2 = vpop.f32.mrb[17].mxu1 }
 0xb46   :  { %v1099_v6 = vpop.f32.mrb[18].mxu1  ;;  %v1103_v8 = vsel %vm285_vm4, %v1102_v0, -inf }
 0xb47   :  { %1104 = vmax.xlane.f32.xlu1 %v1103_v8  ;;  %v1988_v9 = vpop.f32.mrb[19].mxu1 }
 0xb58   :  { %1178 = vrot.lane.b32.xlu1 %v2456_v53, %s2187_s8 }
 0xb5c   :  { %1116 = vrot.lane.b32.xlu1 %v2540_v11, %s2188_s9 }
 0xbd4   :  { %v1105_v14 = vpop.xlane.xlu1 %1104 }
 0xbd5   :  { %v1106_v15 = vsub.f32 %v1102_v0, %v1105_v14 }
 0xbd7   :  { %v1107_v16 = vmul.f32 1.442695, %v1106_v15 }
 0xbd8   :  { %v1179_v18 = vpop.permute.xlu1 %1178 }
 0xbd9   :  { %2138 = vpow2.f32 %v1107_v16  ;;  %v1181_v20 = vmul.f32 %v1179_v18, %v2281_v10 }
 0xbdb   :  { %v1190_v3 = vadd.f32 %v1188_v12, %v1181_v20 }
 0xbdc   :  { %v1117_v22 = vpop.permute.xlu1 %1116 }
 0xbdd   :  { %v1192_v23 = vmul.f32 0.35355338, %v1190_v3  ;;  %v1122_v24 = vsel %vm304_vm5, %v1117_v22, 0 }
 0xbde   :  { %1990 = vmatpush3.bf16.msra.mxu0 %v1122_v24  ;;  %2008 = vmatpush3.bf16.msra.mxu1 %v1122_v24 }
 0xbdf   :  { %v1194_v27 = vpack.c.bf16 %v1192_v23, %v1192_v23  ;;  %1995 = vmatprep.subr.bf16.mxu0 %v2178_v1  ;;  %2013 = vmatprep.subr.bf16.mxu1 %v2178_v1 }
 0xbe1   :  { %1196 = vrot.lane.b32.xlu1 %v1194_v27, %s2189_s10 }
 0xbe3   :  { %v2139_v28 = vpop.eup %2138 }
 0xbe4   :  { %v1109_v30 = vsel %vm285_vm4, %v2139_v28, 0.0 }
 0xbe5   :  { %1110 = vadd.xlane.f32.xlu0 %v1109_v30  ;;  %1242 = vrot.lane.b32.xlu1 %v1193_v29, %s2190_s11 }
 0xbe9   :  { %966 = vrot.lane.b32.xlu1 %v2447_v52, %s2191_s12 }
 0xbfb   :  { %1365 = vrot.lane.b32.xlu0 %v2447_v52, %s2192_s13 }
 0xbff   :  { %953 = vrot.lane.b32.xlu0 %v2447_v52, %s2193_s14 }
 0xc03   :  { %962 = vrot.lane.b32.xlu0 %v2456_v53, %s2193_s14 }
 0xc53   :  { %v1197_v31 = vpop.permute.xlu1 %1196 }
 0xc57   :  { %v1243_v32 = vpop.permute.xlu1 %1242 }
 0xc5b   :  { %v967_v33 = vpop.permute.xlu1 %966 }
 0xc5c   :  { %v969_v34 = vmul.f32 %v967_v33, %v2281_v10 }
 0xc5e   :  { %971 = vrot.lane.b32.xlu0 %v969_v34, %s2182_s29 }
 0xc62   :  { %1361 = vrot.lane.b32.xlu0 %v2456_v53, %s2194_s15 }
 0xc72   :  { %v1111_v35 = vpop.xlane.xlu0 %1110 }
 0xc73   :  { %2140 = vrcp.f32 %v1111_v35 }
 0xc76   :  { %v1366_v36 = vpop.permute.xlu0 %1365 }
 0xc77   :  { %v1368_v37 = vmul.f32 %v1366_v36, %v2281_v10 }
 0xc79   :  { %1370 = vrot.lane.b32.xlu0 %v1368_v37, %s2182_s29 }
 0xc7a   :  { %v954_v38 = vpop.permute.xlu0 %953 }
 0xc7b   :  { %v956_v39 = vmul.f32 %v954_v38, %v2281_v10 }
 0xc7d   :  { %v2141_v40 = vpop.eup %2140  ;;  %958 = vrot.lane.b32.xlu0 %v956_v39, %s2183_s0 }
 0xc7e   :  { %v1113_v41 = vmul.f32 %v2141_v40, %v2139_v28 }
 0xc80   :  { %v1114_v42 = vpack.c.bf16 %v1113_v41, %v1113_v41 }
 0xc82   :  { %1992 = vmatmul.mubr.msk.bf16.vlgmr.msra.gmra.mrb[20].mxu0 %vm285_vm4, %v1114_v42 }
 0xc83   :  { %1996 = vmatpush3.bf16.xpose.msra.mxu0 %v2511_v48  ;;  %1997 = vmatprep.mubr.msk.bf16.mxu0 %vm2179_vm0, %v2178_v1 }
 0xc84   :  { %2001 = vmatprep.subr.bf16.mxu0 %v2178_v1 }
 0xc8a   :  { %1998 = vmatmul.mubr.msk.bf16.vlgmr.msra.gmra.mrb[24].mxu0 %vm188_vm2, %v1197_v31 }
 0xc8b   :  { %2002 = vmatpush3.bf16.xpose.msra.mxu0 %v2519_v7  ;;  %2003 = vmatprep.mubr.msk.bf16.mxu0 %vm2179_vm0, %v2178_v1  ;;  %v963_v7 = vpop.permute.xlu0 %962 }
 0xc8c   :  { %2025 = vmatprep.subr.bf16.mxu0 %v2178_v1  ;;  %v965_v60 = vmul.f32 %v963_v7, %v2281_v10 }
 0xc96   :  { %2004 = vmatmul.mubr.msk.bf16.vlgmr.msra.gmra.mrb[24].mxu0 %vm188_vm2, %v1243_v32 }
 0xc97   :  { %2027 = vmatprep.mubr.msk.bf16.mxu0 %vm2179_vm0, %v2178_v1 }
 0xcd0   :  { %v972_v54 = vpop.permute.xlu0 %971 }
 0xcd1   :  { %v974_v2 = vadd.f32 %v972_v54, %v965_v60 }
 0xcd3   :  { %v976_v12 = vpack.c.bf16 %v974_v2, %v974_v2 }
 0xcd4   :  { %v1362_v55 = vpop.permute.xlu0 %1361 }
 0xcd5   :  { %v1364_v61 = vmul.f32 %v1362_v55, %v2281_v10 }
 0xceb   :  { %v1371_v59 = vpop.permute.xlu0 %1370 }
 0xcec   :  { %v1373_v6 = vadd.f32 %v1371_v59, %v1364_v61 }
 0xcee   :  { %v1375_v13 = vmul.f32 0.35355338, %v1373_v6 }
 0xcef   :  { %v959_v15 = vpop.permute.xlu0 %958 }
 0xcf0   :  { %v1377_v16 = vpack.c.bf16 %v1375_v13, %v1375_v13 }
 0xd55   :  { %v1158_v43 = vpop.f32.mrb[20].mxu0 }
 0xd56   :  { %1164 = vst.msk [vmem:[#allocation2 + $0x8] sm:$0xff] %vm285_vm4, %v1158_v43  ;;  %v1993_v44 = vpop.f32.mrb[21].mxu0 }
 0xd57   :  { %v1161_v45 = vpop.f32.mrb[22].mxu0 }
 0xd58   :  { %v1994_v46 = vpop.f32.mrb[23].mxu0 }
 0xd69   :  { %v1281_v4 = vpop.f32.mrb[24].mxu0 }
 0xd6a   :  { %v1287_v47 = vsel %vm2327_vm3, %v1281_v4, -1e+30  ;;  %v2005_v5 = vpop.f32.mrb[25].mxu0 }
 0xd6b   :  { %v1284_v48 = vpop.f32.mrb[26].mxu0  ;;  %v1288_v49 = vsel %vm285_vm4, %v1287_v47, -inf }
 0xd6c   :  { %1289 = vmax.xlane.f32.xlu1 %v1288_v49  ;;  %v2006_v51 = vpop.f32.mrb[27].mxu0 }
 0xd7d   :  { %1352 = vrot.lane.b32.xlu1 %v2447_v52, %s2194_s15 }
 0xd81   :  { %949 = vrot.lane.b32.xlu1 %v2456_v53, %s2191_s12 }
 0xd85   :  { %1348 = vrot.lane.b32.xlu1 %v2456_v53, %s2192_s13 }
 0xdf9   :  { %v1290_v56 = vpop.xlane.xlu1 %1289 }
 0xdfa   :  { %v1291_v57 = vsub.f32 %v1287_v47, %v1290_v56 }
 0xdfc   :  { %v1292_v62 = vmul.f32 1.442695, %v1291_v57 }
 0xdfd   :  { %v1353_v0 = vpop.permute.xlu1 %1352 }
 0xdfe   :  { %2142 = vpow2.f32 %v1292_v62  ;;  %v1355_v8 = vmul.f32 %v1353_v0, %v2281_v10 }
 0xe00   :  { %1357 = vrot.lane.b32.xlu0 %v1355_v8, %s2183_s0 }
 0xe01   :  { %v950_v9 = vpop.permute.xlu1 %949 }
 0xe02   :  { %v952_v14 = vmul.f32 %v950_v9, %v2281_v10 }
 0xe04   :  { %1382 = vrot.lane.b32.xlu0 %v976_v12, %s2195_s16  ;;  %v961_v17 = vsub.f32 %v952_v14, %v959_v15 }
 0xe05   :  { %v1349_v21 = vpop.permute.xlu1 %1348 }
 0xe06   :  { %v975_v20 = vpack.c.bf16 %v961_v17, %v961_v17  ;;  %v1351_v3 = vmul.f32 %v1349_v21, %v2281_v10 }
 0xe08   :  { %v2143_v18 = vpop.eup %2142  ;;  %1379 = vrot.lane.b32.xlu0 %v1377_v16, %s2196_s17 }
 0xe09   :  { %v1294_v19 = vsel %vm285_vm4, %v2143_v18, 0.0 }
 0xe0a   :  { %1295 = vadd.xlane.f32.xlu1 %v1294_v19 }
 0xe0c   :  { %1434 = vrot.lane.b32.xlu0 %v975_v20, %s2197_s18 }
 0xe1b   :  { %1565 = vrot.lane.b32.xlu1 %v2447_v52, %s2199_s20 }
 0xe1f   :  { %1561 = vrot.lane.b32.xlu1 %v2456_v53, %s2200_s21 }
 0xe72   :  { %v1358_v22 = vpop.permute.xlu0 %1357 }
 0xe73   :  { %v1360_v23 = vsub.f32 %v1351_v3, %v1358_v22 }
 0xe75   :  { %v1374_v24 = vmul.f32 0.35355338, %v1360_v23 }
 0xe76   :  { %v1383_v30 = vpop.permute.xlu0 %1382 }
 0xe77   :  { %v1376_v26 = vpack.c.bf16 %v1374_v24, %v1374_v24  ;;  %v2611_v35 = vsel %vm188_vm2, %v1383_v30, 0 }
 0xe79   :  { %1431 = vrot.lane.b32.xlu0 %v1376_v26, %s2198_s19 }
 0xe7a   :  { %v1380_v34 = vpop.permute.xlu0 %1379 }
 0xe7e   :  { %v1435_v36 = vpop.permute.xlu0 %1434 }
 0xe7f   :  { %v1440_v37 = vsel %vm188_vm2, %v1435_v36, 0 }
 0xe97   :  { %v1296_v27 = vpop.xlane.xlu1 %1295 }
 0xe98   :  { %2144 = vrcp.f32 %v1296_v27 }
 0xe9b   :  { %v1566_v28 = vpop.permute.xlu1 %1565 }
 0xe9c   :  { %v1568_v29 = vmul.f32 %v1566_v28, %v2281_v10 }
 0xe9e   :  { %1570 = vrot.lane.b32.xlu1 %v1568_v29, %s2182_s29 }
 0xe9f   :  { %v1562_v47 = vpop.permute.xlu1 %1561 }
 0xea0   :  { %v1564_v48 = vmul.f32 %v1562_v47, %v2281_v10 }
 0xea2   :  { %v2145_v31 = vpop.eup %2144  ;;  %1548 = vrot.lane.b32.xlu1 %v2456_v53, %s2199_s20 }
 0xea3   :  { %v1298_v32 = vmul.f32 %v2145_v31, %v2143_v18 }
 0xea5   :  { %v1299_v33 = vpack.c.bf16 %v1298_v32, %v1298_v32 }
 0xea7   :  { %2010 = vmatmul.mubr.msk.bf16.vlgmr.msra.gmra.mrb[20].mxu1 %vm285_vm4, %v1299_v33 }
 0xea8   :  { %2014 = vmatpush3.bf16.xpose.msra.mxu1 %v2611_v35  ;;  %2015 = vmatprep.mubr.msk.bf16.mxu1 %vm2179_vm0, %v2178_v1 }
 0xea9   :  { %2019 = vmatprep.subr.bf16.mxu1 %v2178_v1 }
 0xeaf   :  { %2016 = vmatmul.mubr.msk.bf16.vlgmr.msra.gmra.mrb[24].mxu1 %vm188_vm2, %v1380_v34 }
 0xeb0   :  { %2020 = vmatpush3.bf16.xpose.msra.mxu1 %v1440_v37  ;;  %2021 = vmatprep.mubr.msk.bf16.mxu1 %vm2179_vm0, %v2178_v1 }
 0xeb1   :  { %2043 = vmatprep.subr.bf16.mxu1 %v2178_v1 }
 0xeeb   :  { %v1432_v53 = vpop.permute.xlu0 %1431 }
 0xeec   :  { %2022 = vmatmul.mubr.msk.bf16.vlgmr.msra.gmra.mrb[24].mxu1 %vm188_vm2, %v1432_v53  ;;  %v2121_v53 = vld [vmem:[%s2698_s2 + $0x8] sm:$0xff]  }
 0xeed   :  { %2045 = vmatprep.mubr.msk.bf16.mxu1 %vm2179_vm0, %v2178_v1 }
 0xf10   :  { %v1571_v5 = vpop.permute.xlu1 %1570 }
 0xf11   :  { %v1573_v49 = vadd.f32 %v1571_v5, %v1564_v48 }
 0xf13   :  { %v1575_v51 = vmul.f32 0.35355338, %v1573_v49 }
 0xf14   :  { %v1549_v62 = vpop.permute.xlu1 %1548 }
 0xf15   :  { %v1577_v7 = vpack.c.bf16 %v1575_v51, %v1575_v51  ;;  %v1551_v0 = vmul.f32 %v1549_v62, %v2281_v10 }
 0xf7a   :  { %v2626_v38 = vpop.f32.mrb[20].mxu1 }
 0xf7b   :  { %v2011_v39 = vpop.f32.mrb[21].mxu1 }
 0xf7c   :  { %v1340_v40 = vpop.f32.mrb[22].mxu1 }
 0xf7d   :  { %v2012_v41 = vpop.f32.mrb[23].mxu1 }
 0xfbf   :  { %v1476_v42 = vpop.f32.mrb[24].mxu1 }
 0xfc0   :  { %v1482_v43 = vsel %vm2327_vm3, %v1476_v42, -1e+30  ;;  %v2023_v44 = vpop.f32.mrb[25].mxu1 }
 0xfc1   :  { %v1483_v45 = vsel %vm285_vm4, %v1482_v43, -inf  ;;  %v1479_v46 = vpop.f32.mrb[26].mxu1 }
 0xfc2   :  { %1484 = vmax.xlane.f32.xlu0 %v1483_v45  ;;  %v2024_v4 = vpop.f32.mrb[27].mxu1 }
 0xfd8   :  { %1552 = vrot.lane.b32.xlu0 %v2447_v52, %s2200_s21 }
 0xfdc   :  { %1495 = vrot.lane.b32.xlu0 %v2540_v11, %s2201_s22 }
 0xfe0   :  { %1579 = vrot.lane.b32.xlu0 %v1577_v7, %s2705_s3 }
0x104f   :  { %v1485_v54 = vpop.xlane.xlu0 %1484 }
0x1050   :  { %v1486_v52 = vsub.f32 %v1482_v43, %v1485_v54 }
0x1052   :  { %v1487_v11 = vmul.f32 1.442695, %v1486_v52 }
0x1053   :  { %v1553_v55 = vpop.permute.xlu0 %1552 }
0x1054   :  { %v1555_v56 = vmul.f32 %v1553_v55, %v2281_v10  ;;  %2146 = vpow2.f32 %v1487_v11 }
0x1056   :  { %1557 = vrot.lane.b32.xlu1 %v1555_v56, %s2183_s0  ;;  %s2204_s0 = smov [#allocation3]  }
0x1057   :  { %v1496_v57 = vpop.permute.xlu0 %1495  ;;  %s1801_s30 = sshll.u32 %s2204_s0, 4  ;;  %s1802_s30 = int_to_ptr.vmem [resolvable:$true] %s1801_s30 }
0x1058   :  { %v1501_v59 = vsel %vm304_vm5, %v1496_v57, 0  ;;  %p2159_p1 = scmp.lt.s32.totalorder %s1802_s30, %s1802_s30 }
0x1059   :  { %2026 = vmatpush3.bf16.msra.mxu0 %v1501_v59  ;;  %2044 = vmatpush3.bf16.msra.mxu1 %v1501_v59 }
0x105a   :  { %2031 = vmatprep.subr.bf16.mxu0 %v2178_v1  ;;  %2049 = vmatprep.subr.bf16.mxu1 %v2178_v1 }
0x105b   :  { %v1580_v10 = vpop.permute.xlu0 %1579 }
0x105e   :  { %v2147_v60 = vpop.eup %2146 }
0x105f   :  { %v1489_v61 = vsel %vm285_vm4, %v2147_v60, 0.0 }
0x107a   :  { %1490 = vadd.xlane.f32.xlu1 %v1489_v61 }
0x10c8   :  { %v1558_v2 = vpop.permute.xlu1 %1557 }
0x10c9   :  { %v1560_v6 = vsub.f32 %v1551_v0, %v1558_v2 }
0x10cb   :  { %v1574_v8 = vmul.f32 0.35355338, %v1560_v6 }
0x10cd   :  { %v1576_v9 = vpack.c.bf16 %v1574_v8, %v1574_v8 }
0x10cf   :  { %1625 = vrot.lane.b32.xlu0 %v1576_v9, %s2203_s24 }
0x1107   :  { %v1491_v12 = vpop.xlane.xlu1 %1490 }
0x1108   :  { %2148 = vrcp.f32 %v1491_v12 }
0x1112   :  { %v2149_v13 = vpop.eup %2148 }
0x1113   :  { %v1493_v14 = vmul.f32 %v2149_v13, %v2147_v60 }
0x1115   :  { %v1494_v15 = vpack.c.bf16 %v1493_v14, %v1493_v14 }
0x1117   :  { %2028 = vmatmul.mubr.msk.bf16.vlgmr.msra.gmra.mrb[28].mxu0 %vm285_vm4, %v1494_v15 }
0x1118   :  { %2032 = vmatpush3.bf16.xpose.msra.mxu0 %v2611_v35  ;;  %2033 = vmatprep.mubr.msk.bf16.mxu0 %vm2179_vm0, %v2178_v1 }
0x1119   :  { %2037 = vmatprep.subr.bf16.mxu0 %v2178_v1 }
0x111f   :  { %2034 = vmatmul.mubr.msk.bf16.vlgmr.msra.gmra.mrb[32].mxu0 %vm188_vm2, %v1580_v10 }
0x1120   :  { %2038 = vmatpush3.bf16.xpose.msra.mxu0 %v1440_v37  ;;  %2039 = vmatprep.mubr.msk.bf16.mxu0 %vm2179_vm0, %v2178_v1 }
0x1141   :  { %v1626_v16 = vpop.permute.xlu0 %1625 }
0x1142   :  { %2040 = vmatmul.mubr.msk.bf16.vlgmr.msra.gmra.mrb[32].mxu0 %vm188_vm2, %v1626_v16 }
0x11ea   :  { %v1537_v17 = vpop.f32.mrb[28].mxu0 }
0x11eb   :  { %v2029_v18 = vpop.f32.mrb[29].mxu0 }
0x11ec   :  { %v1540_v19 = vpop.f32.mrb[30].mxu0 }
0x11ed   :  { %v2030_v20 = vpop.f32.mrb[31].mxu0 }
0x1215   :  { %v1664_v21 = vpop.f32.mrb[32].mxu0 }
0x1216   :  { %v1670_v3 = vsel %vm2327_vm3, %v1664_v21, -1e+30  ;;  %v2041_v22 = vpop.f32.mrb[33].mxu0 }
0x1217   :  { %v1671_v23 = vsel %vm285_vm4, %v1670_v3, -inf  ;;  %v1667_v24 = vpop.f32.mrb[34].mxu0 }
0x1218   :  { %1672 = vmax.xlane.f32.xlu0 %v1671_v23  ;;  %v2042_v26 = vpop.f32.mrb[35].mxu0 }
0x122e   :  { %1344 = vrot.lane.b32.xlu0 %v2626_v38, %s2186_s7 }
0x12a5   :  { %v1673_v27 = vpop.xlane.xlu0 %1672 }
0x12a6   :  { %v1674_v28 = vsub.f32 %v1670_v3, %v1673_v27 }
0x12a8   :  { %v1675_v29 = vmul.f32 1.442695, %v1674_v28 }
0x12a9   :  { %v1345_v30 = vpop.permute.xlu0 %1344 }
0x12aa   :  { %2150 = vpow2.f32 %v1675_v29  ;;  %1347 = vst.msk [vmem:[#allocation2 + $0x8] sm:$0xff] %vm531_vm6, %v1345_v30 }
0x12b4   :  { %v2151_v31 = vpop.eup %2150 }
0x12b5   :  { %v1677_v50 = vsel %vm285_vm4, %v2151_v31, 0.0 }
0x12b6   :  { %1678 = vadd.xlane.f32.xlu1 %v1677_v50 }
0x12c7   :  { %528 = vrot.lane.b32.xlu1 %v2427_v25, %s2186_s7 }
0x12cb   :  { %729 = vrot.lane.b32.xlu1 %v2482_v63, %s2192_s13 }
0x12cf   :  { %1544 = vrot.lane.b32.xlu1 %v1537_v17, %s2192_s13 }
0x12d3   :  { %913 = vrot.lane.b32.xlu1 %v2531_v58, %s2199_s20  ;;  %v2120_v58 = vld [vmem:[%s2698_s2] sm:$0xff]   ;;  %s2154_s2 = scalar_lea.vmem %s1802_s30, 256 }
0x12d4   :  { %p2155_p0 = scmp.ne.s32.totalorder %s1802_s30, %s2154_s2  ;;  %p2160_p2 = scmp.lt.s32.totalorder %s2154_s2, %s2154_s2 }
0x12d6   :  { %p2161_p3 = por %p2160_p2, %p2159_p1 }
0x12d8   :  { %p2162_p4 = pnand %p2161_p3, %p2155_p0 }
0x1343   :  { %v1679_v32 = vpop.xlane.xlu1 %1678 }
0x1344   :  { %2152 = vrcp.f32 %v1679_v32 }
0x1347   :  { %v529_v33 = vpop.permute.xlu1 %528 }
0x1348   :  { %532 = vst.msk [vmem:[#allocation2] sm:$0xff] %vm531_vm6, %v529_v33 }
0x134b   :  { %v730_v34 = vpop.permute.xlu1 %729 }
0x134c   :  { %733 = vst.msk [vmem:[#allocation2] sm:$0xff] %vm732_vm7, %v730_v34 }
0x134e   :  { %v2153_v35 = vpop.eup %2152 }
0x134f   :  { %v1681_v36 = vmul.f32 %v2153_v35, %v2151_v31  ;;  %v1545_v37 = vpop.permute.xlu1 %1544 }
0x1350   :  { %1547 = vst.msk [vmem:[#allocation2 + $0x8] sm:$0xff] %vm732_vm7, %v1545_v37 }
0x1351   :  { %v1682_v25 = vpack.c.bf16 %v1681_v36, %v1681_v36 }
0x1353   :  { %2046 = vmatmul.mubr.msk.bf16.vlgmr.msra.gmra.mrb[28].mxu1 %vm285_vm4, %v1682_v25  ;;  %v914_v63 = vpop.permute.xlu1 %913 }
0x1354   :  { %917 = vst.msk [vmem:[#allocation2] sm:$0xff] %vm916_vm8, %v914_v63  ;;  %2053 = vmatprep.mubr.msk.bf16.mxu1 %vm2179_vm0, %v2178_v1  ;;  %2050 = vmatpush3.bf16.msra.mxu1 %v2120_v58 }
0x1355   :  { %2051 = vmatprep.subr.bf16.mxu1 %v2178_v1 }
0x1358   :  { %2052 = vmatpush3.bf16.msra.mxu1 %v2121_v53 }
0x135b   :  { %v1731_v43 = vld [vmem:[#allocation2] sm:$0xff] }
0x1426   :  { %v1720_v38 = vpop.f32.mrb[28].mxu1 }
0x1427   :  { %1727 = vrot.lane.b32.xlu0 %v1720_v38, %s2199_s20  ;;  %v2047_v39 = vpop.f32.mrb[29].mxu1 }
0x1428   :  { %v1723_v40 = vpop.f32.mrb[30].mxu1 }
0x1429   :  { %v2048_v41 = vpop.f32.mrb[31].mxu1 }
0x1499   :  { %v1728_v42 = vpop.permute.xlu0 %1727 }
0x149a   :  { %1730 = vst.msk [vmem:[#allocation2 + $0x8] sm:$0xff] %vm916_vm8, %v1728_v42 }
0x14a1   :  { %v1732_v44 = vld [vmem:[#allocation2 + $0x8] sm:$0xff] }
0x14a2   :  { %v1733_v45 = vpack.c.bf16 %v1732_v44, %v1731_v43 }
0x14a4   :  { %2054 = vmatmul.mubr.msk.bf16.vlgmr.msra.gmra.mrb[32].mxu1 %vm45_vm1, %v1733_v45 }
0x1577   :  { %v1787_v46 = vpop.f32.mrb[32].mxu1 }
0x1578   :  { %1794 = vst.msk [vmem:[#allocation3] sm:$0xff] %vm45_vm1, %v1787_v46  ;;  %v2055_v1 = vpop.f32.mrb[33].mxu1 }
0x1579   :  { %v1790_v4 = vpop.f32.mrb[34].mxu1 }
0x157a   :  { %1795 = vst.msk [vmem:[#allocation3 + $0x8] sm:$0xff] %vm45_vm1, %v1790_v4  ;;  %v2056_v47 = vpop.f32.mrb[35].mxu1 }
0x157b   :  { %2165 = shalt.err (!%p2162_p4)
}
0x157c   :  { %s2166_s9 = scalar_lea.hbm %s2701_s5, 256 }
0x157d   :  { %p2167_p5 = scmp.ne.s32.totalorder %s2701_s5, %s2166_s9  ;;  %p2170_p6 = scmp.lt.u32.totalorder %s2166_s9, %s2701_s5 }
0x157f   :  { %p2172_p7 = pnand %p2170_p6, %p2167_p5 }
0x1581   :  { %2175 = shalt.err (!%p2172_p7)
}
0x1582   :  { %s2205_s14 = smov 128  }
0x1583   :  { %1807 = dma.vmem_to_hbm [thread:$0]  %s1802_s30, 256, %s2701_s5, [#allocation4], %s2205_s14, %s2205_s14, %s2186_s7  }
0x1584   :  { %2176 = dma.done.wait [#allocation4], 256  }
0x1585   :  { %2177 = vsyncadd [#allocation4], 4294967040 }
0x1586   :  { %1811 = vsyncpa [#allocation4], 1 }

</bundles_post_ra>
